<compile_context>
chip_gen: v6e
topology: v6e:2x2x1
jax: 0.10.0
libtpu: 0.0.40
codegen_flags: <defaults>
</compile_context>

<pallas_src>
import jax
import jax.numpy as jnp
import numpy as np
from jax.experimental import pallas as pl
from jax.experimental.pallas import tpu as pltpu


def _round_up(x, m):
    return (x + m - 1) // m * m


def _pick_bb(batch, seqp, emb2, cnn2p, vmem_budget=24 << 20, bb_max=512):
    """Batch-block size from a VMEM budget dominated by the f32 temporaries."""
    # Per batch item per grid step (bytes):
    #   bf16 input tile (double-buffered)            :  4 * seqp * emb2
    #   f32 rolled-tap copies of the input (~3 live) : 12 * seqp * emb2
    #   f32 epilogue temporaries (y, v, diff, prod)  : 16 * seqp * cnn2p
    per_item = 16 * seqp * (emb2 + cnn2p)
    cap = max(8, (vmem_budget // per_item) // 8 * 8)
    if cap >= 128 and batch >= 64:
        bb = min(cap // 128 * 128, bb_max, _round_up(batch, 128))
        # Keep >= 2 grid blocks when the batch allows it (v7x megacore).
        if batch > 128 and _round_up(batch, bb) == bb:
            bb = max(128, _round_up((batch + 1) // 2, 128))
    else:
        bb = min(cap, bb_max, _round_up(batch, 8))
    return int(bb)


def _make_kernel(bb, seqp, seqm, kern, emb2, cnnp):
    rows = bb * seqp          # conv rows processed per grid step
    cnn2p = 2 * cnnp

    def kernel(x_ref, w_ref, bconv_ref, wfc_ref, bfc_ref, out_ref):
        # x_ref: (bb, seqp, 2*emb) bf16, raw [b1 | b2] features (no im2col).
        # w_ref: (kern, 2*emb, 2*cnnp) bf16 block-diagonal per-tap conv weights.
        xf = x_ref[...].reshape(rows, emb2)                        # bf16
        # Tap 0 straight; taps k>0 via a static roll so row p reads row p+k.
        # Rolled/wrapped rows only land on conv positions >= seqm, which the
        # validity mask below zeroes out.
        y = jnp.dot(xf, w_ref[0], preferred_element_type=jnp.float32)
        if kern > 1:
            xf32 = xf.astype(jnp.float32)       # shift in unpacked f32 layout
            for k in range(1, kern):
                xk = jnp.roll(xf32, -k, axis=0).astype(jnp.bfloat16)
                y = y + jnp.dot(xk, w_ref[k],
                                preferred_element_type=jnp.float32)

        # Row r is conv position r % seqp of item r // seqp; only positions
        # < seqm are real conv outputs (the rest is seq padding / wrap).
        pos = jax.lax.broadcasted_iota(jnp.int32, (rows, 1), 0) % seqp
        valid = pos < seqm

        # relu with the validity mask folded in: v1, v2 (and v1*v2) are >= 0,
        # so zeroing the invalid rows is safe for the per-item max.
        v = jnp.where(valid, jnp.maximum(y + bconv_ref[...], 0.0), 0.0)
        v1 = v[:, :cnnp]                                  # lane-aligned halves
        v2 = v[:, cnnp:]

        def block_max(a):                       # (rows, cnnp) -> (bb, cnnp)
            return jnp.max(a.reshape(bb, seqp, cnnp), axis=1)

        m1 = block_max(v1)
        m2 = block_max(v2)
        m4 = block_max(v1 * v2)
        # v1 - v2 can be negative: only this branch needs the -inf mask.
        m3 = block_max(jnp.where(valid, v1 - v2, jnp.float32(-jnp.inf)))

        # fc1 folded as per-branch weighted sums; wfc row j == weights of
        # concat block j ([v1, v2, v1-v2, v1*v2] order).
        net = (m1 * wfc_ref[0:1, :] + m2 * wfc_ref[1:2, :]
               + m3 * wfc_ref[2:3, :] + m4 * wfc_ref[3:4, :])      # (bb, cnnp)
        logit = jnp.sum(net, axis=-1, keepdims=True) + bfc_ref[0]  # (bb, 1)
        prob = jax.nn.sigmoid(logit)

        # Lane-dense emit: move the per-item column onto the lane axis without
        # a transpose relayout (diagonal select + sublane reduce).
        r = jax.lax.broadcasted_iota(jnp.int32, (bb, bb), 0)
        c = jax.lax.broadcasted_iota(jnp.int32, (bb, bb), 1)
        row = jnp.sum(jnp.where(r == c, prob, 0.0), axis=0, keepdims=True)
        out_ref[...] = row.reshape(1, 1, bb)

    return kernel


def synonymy_forward(b1, b2, params):
    """b1, b2: (B, seq, emb) float32 BERT embeddings. Returns (B, 1) sigmoid scores."""
    B, seq, emb = b1.shape
    wconv = params["wconv"]                      # (kern, 2*emb, 2*cnn_pad) bf16
    kern, emb2, cnn2p = wconv.shape
    if emb2 != 2 * emb:
        raise ValueError("embedding size mismatch between inputs and weights")
    cnnp = cnn2p // 2
    seqm = seq - kern + 1                        # valid conv output length
    if seqm < 1:
        raise ValueError(f"seq ({seq}) must be >= conv kernel size ({kern})")
    seqp = _round_up(seq, 8)                     # sublane-aligned rows per item

    bb = _pick_bb(B, seqp, emb2, cnn2p)          # items per grid step
    b_pad = _round_up(B, bb)
    nblk = b_pad // bb

    # Fused input: [b1 | b2] on the feature axis, batch/seq zero-padded, bf16.
    x = jnp.concatenate([b1, b2], axis=-1)
    x = jnp.pad(x, ((0, b_pad - B), (0, seqp - seq), (0, 0))).astype(jnp.bfloat16)

    kernel = _make_kernel(bb, seqp, seqm, kern, emb2, cnnp)

    out = pl.pallas_call(
        kernel,
        out_shape=jax.ShapeDtypeStruct((nblk, 1, bb), jnp.float32),
        grid_spec=pltpu.PrefetchScalarGridSpec(
            num_scalar_prefetch=0,
            grid=(nblk,),
            in_specs=[
                pl.BlockSpec((bb, seqp, emb2), lambda i: (i, 0, 0)),     # fused inputs
                pl.BlockSpec((kern, emb2, cnn2p), lambda i: (0, 0, 0)),  # conv weights
                pl.BlockSpec((1, cnn2p), lambda i: (0, 0)),              # conv biases
                pl.BlockSpec((4, cnnp), lambda i: (0, 0)),               # fc1 weight
                pl.BlockSpec(memory_space=pltpu.MemorySpace.SMEM),       # fc1 bias scalar
            ],
            out_specs=pl.BlockSpec((1, 1, bb), lambda i: (i, 0, 0)),
        ),
        compiler_params=pltpu.CompilerParams(
            dimension_semantics=("parallel",),
            vmem_limit_bytes=48 << 20),   # fits v7x's 64 MiB VMEM; ample on v5e/v6e
    )(x, wconv, params["bconv"], params["wfc"], params["bfc"])

    return out.reshape(-1)[:B, None]


def init_params(key, emb, cnn, kern):
    """Deterministic synthetic weights, converted from PyTorch layout to kernel layout."""
    cnnp = _round_up(cnn, 128)                   # 200 -> 256 (two lane tiles)
    k1, k2, k3, k4, k5, k6 = jax.random.split(key, 6)
    s_conv = 1.0 / np.sqrt(emb * kern)
    s_fc = 1.0 / np.sqrt(cnn * 4)

    def conv_w(k):
        # PyTorch Conv1d weight (C_out, C_in, K) -> per-tap (K, emb, cnnp), zero-padded.
        w_pt = jax.random.uniform(k, (cnn, emb, kern), jnp.float32, -s_conv, s_conv)
        w = jnp.transpose(w_pt, (2, 1, 0))                       # (K, emb, cnn)
        return jnp.pad(w, ((0, 0), (0, 0), (0, cnnp - cnn)))

    w1, w2 = conv_w(k1), conv_w(k2)
    zeros = jnp.zeros_like(w1)
    # Block-diagonal per-tap weight so one matmul computes both convs:
    # [[w1, 0], [0, w2]] -> (K, 2*emb, 2*cnnp), pre-cast to bf16 once.
    wconv = jnp.concatenate(
        [jnp.concatenate([w1, zeros], axis=2),
         jnp.concatenate([zeros, w2], axis=2)], axis=1).astype(jnp.bfloat16)

    def pad_bias(k):
        b = jax.random.uniform(k, (cnn,), jnp.float32, -s_conv, s_conv)
        return jnp.pad(b, (0, cnnp - cnn))

    bconv = jnp.concatenate([pad_bias(k3), pad_bias(k4)])[None, :]   # (1, 2*cnnp)

    # PyTorch fc1 weight (1, 4*cnn) -> (4, cnnp); row j == weights for cat block j.
    wfc_pt = jax.random.uniform(k5, (1, 4 * cnn), jnp.float32, -s_fc, s_fc)
    wfc = jnp.pad(wfc_pt.reshape(4, cnn), ((0, 0), (0, cnnp - cnn)))

    bfc = jax.random.uniform(k6, (1,), jnp.float32, -s_fc, s_fc)     # (1,) SMEM scalar
    return {"wconv": wconv, "bconv": bconv, "wfc": wfc, "bfc": bfc}


def ref_forward(b1, b2, params):
    """Pure-JAX reference mirroring the PyTorch arch==3 forward, using the same
    bf16 inputs/conv-weights with f32 accumulation as the kernel."""
    wconv = params["wconv"]                          # (kern, 2*emb, 2*cnnp) bf16
    kern, emb2, cnn2p = wconv.shape
    cnnp = cnn2p // 2
    seqm = b1.shape[1] - kern + 1

    x = jnp.concatenate([b1, b2], axis=-1).astype(jnp.bfloat16)      # (B, seq, 2*emb)
    y = sum(jnp.einsum("bse,ec->bsc", x[:, k:k + seqm, :], wconv[k],
                       preferred_element_type=jnp.float32)
            for k in range(kern))
    v = jnp.maximum(y + params["bconv"][None], 0.0)                  # (B, seqm, 2*cnnp)
    v1, v2 = v[..., :cnnp], v[..., cnnp:]
    merged = jnp.concatenate([v1, v2, v1 - v2, v1 * v2], axis=-1)    # (B, seqm, 4*cnnp)
    net = jnp.max(merged, axis=1)                                    # (B, 4*cnnp)
    logit = net @ params["wfc"].reshape(-1) + params["bfc"][0]
    return jax.nn.sigmoid(logit)[:, None]


if __name__ == "__main__":
    B, SEQ, EMB, CNN, KERN = 2, 8, 32, 200, 3   # small demo shapes; cnn_size=200 per module

    key = jax.random.PRNGKey(0)
    kp, kb1, kb2 = jax.random.split(key, 3)
    params = init_params(kp, EMB, CNN, KERN)

    b1 = jax.random.normal(kb1, (B, SEQ, EMB), jnp.float32)
    b2 = jax.random.normal(kb2, (B, SEQ, EMB), jnp.float32)

    out = synonymy_forward(b1, b2, params)
    jax.block_until_ready(out)

    expected = ref_forward(b1, b2, params)
    np.testing.assert_allclose(np.asarray(out), np.asarray(expected),
                               rtol=1e-4, atol=1e-4)
    print("KERNEL_OK")
</pallas_src>

<mosaic_0001>
module attributes {stable_mosaic.version = 11 : i64} {
  func.func @kernel(%arg0: i32, %arg1: memref<8x8x64xbf16, #tpu.memory_space<vmem>>, %arg2: memref<3x64x512xbf16, #tpu.memory_space<vmem>>, %arg3: memref<1x512xf32, #tpu.memory_space<vmem>>, %arg4: memref<4x256xf32, #tpu.memory_space<vmem>>, %arg5: memref<1xf32, #tpu.memory_space<smem>>, %arg6: memref<1x1x8xf32, #tpu.memory_space<vmem>>) attributes {dimension_semantics = [#tpu.dimension_semantics<parallel>], iteration_bounds = array<i64: 1>, scalar_prefetch = 0 : i64, scratch_operands = 0 : i64, tpu.core_type = #tpu.core_type<tc>, window_params = [{transform_indices = @transform_0, window_bounds = array<i64: 8, 8, 64>}, {pipeline_mode = #tpu.pipeline_mode<synchronous>, transform_indices = @transform_1, window_bounds = array<i64: 3, 64, 512>}, {pipeline_mode = #tpu.pipeline_mode<synchronous>, transform_indices = @transform_2, window_bounds = array<i64: 1, 512>}, {pipeline_mode = #tpu.pipeline_mode<synchronous>, transform_indices = @transform_3, window_bounds = array<i64: 4, 256>}, {transform_indices = @transform_4, window_bounds = array<i64: 1>}, {transform_indices = @transform_5, window_bounds = array<i64: 1, 1, 8>}]} {
    %c0 = arith.constant 0 : index
    %c0_0 = arith.constant 0 : index
    %c0_1 = arith.constant 0 : index
    %0 = vector.load %arg1[%c0, %c0_0, %c0_1] : memref<8x8x64xbf16, #tpu.memory_space<vmem>>, vector<8x8x64xbf16>
    %1 = vector.shape_cast %0 : vector<8x8x64xbf16> to vector<64x64xbf16>
    %c0_2 = arith.constant 0 : index
    %c0_3 = arith.constant 0 : index
    %c0_4 = arith.constant 0 : index
    %2 = vector.load %arg2[%c0_2, %c0_3, %c0_4] : memref<3x64x512xbf16, #tpu.memory_space<vmem>>, vector<1x64x512xbf16>
    %3 = vector.shape_cast %2 : vector<1x64x512xbf16> to vector<64x512xbf16>
    %cst = arith.constant dense<0.000000e+00> : vector<64x512xf32>
    %4 = tpu.matmul %1, %3, %cst {dimension_numbers = #tpu.dot_dimension_numbers<[1], [0], [0], [1], [0, 0, 1, 1], [], []>} : vector<64x64xbf16>, vector<64x512xbf16>, vector<64x512xf32> -> vector<64x512xf32>
    %5 = arith.extf %1 : vector<64x64xbf16> to vector<64x64xf32>
    %6 = vector.extract_strided_slice %5 {offsets = [1, 0], sizes = [63, 64], strides = [1, 1]} : vector<64x64xf32> to vector<63x64xf32>
    %7 = vector.extract_strided_slice %5 {offsets = [0, 0], sizes = [1, 64], strides = [1, 1]} : vector<64x64xf32> to vector<1x64xf32>
    %8 = tpu.concatenate %6, %7 in 0 : vector<63x64xf32>, vector<1x64xf32> -> vector<64x64xf32>
    %9 = arith.truncf %8 : vector<64x64xf32> to vector<64x64xbf16>
    %c1 = arith.constant 1 : index
    %c0_5 = arith.constant 0 : index
    %c0_6 = arith.constant 0 : index
    %10 = vector.load %arg2[%c1, %c0_5, %c0_6] : memref<3x64x512xbf16, #tpu.memory_space<vmem>>, vector<1x64x512xbf16>
    %11 = vector.shape_cast %10 : vector<1x64x512xbf16> to vector<64x512xbf16>
    %cst_7 = arith.constant dense<0.000000e+00> : vector<64x512xf32>
    %12 = tpu.matmul %9, %11, %cst_7 {dimension_numbers = #tpu.dot_dimension_numbers<[1], [0], [0], [1], [0, 0, 1, 1], [], []>} : vector<64x64xbf16>, vector<64x512xbf16>, vector<64x512xf32> -> vector<64x512xf32>
    %13 = arith.addf %4, %12 : vector<64x512xf32>
    %14 = vector.extract_strided_slice %5 {offsets = [2, 0], sizes = [62, 64], strides = [1, 1]} : vector<64x64xf32> to vector<62x64xf32>
    %15 = vector.extract_strided_slice %5 {offsets = [0, 0], sizes = [2, 64], strides = [1, 1]} : vector<64x64xf32> to vector<2x64xf32>
    %16 = tpu.concatenate %14, %15 in 0 : vector<62x64xf32>, vector<2x64xf32> -> vector<64x64xf32>
    %17 = arith.truncf %16 : vector<64x64xf32> to vector<64x64xbf16>
    %c2 = arith.constant 2 : index
    %c0_8 = arith.constant 0 : index
    %c0_9 = arith.constant 0 : index
    %18 = vector.load %arg2[%c2, %c0_8, %c0_9] : memref<3x64x512xbf16, #tpu.memory_space<vmem>>, vector<1x64x512xbf16>
    %19 = vector.shape_cast %18 : vector<1x64x512xbf16> to vector<64x512xbf16>
    %cst_10 = arith.constant dense<0.000000e+00> : vector<64x512xf32>
    %20 = tpu.matmul %17, %19, %cst_10 {dimension_numbers = #tpu.dot_dimension_numbers<[1], [0], [0], [1], [0, 0, 1, 1], [], []>} : vector<64x64xbf16>, vector<64x512xbf16>, vector<64x512xf32> -> vector<64x512xf32>
    %21 = arith.addf %13, %20 : vector<64x512xf32>
    %22 = tpu.iota {dimensions = array<i32: 0>} : vector<64x1xi32>
    %c8_i32 = arith.constant 8 : i32
    %c0_i32 = arith.constant 0 : i32
    %23 = arith.cmpi eq, %c8_i32, %c0_i32 : i32
    %c1_i32 = arith.constant 1 : i32
    %24 = arith.select %23, %c1_i32, %c8_i32 : i32
    %25 = vector.broadcast %24 : i32 to vector<64x1xi32>
    %26 = arith.remsi %22, %25 : vector<64x1xi32>
    %c0_i32_11 = arith.constant 0 : i32
    %27 = vector.broadcast %c0_i32_11 : i32 to vector<64x1xi32>
    %28 = arith.cmpi ne, %26, %27 : vector<64x1xi32>
    %c0_i32_12 = arith.constant 0 : i32
    %29 = vector.broadcast %c0_i32_12 : i32 to vector<64x1xi32>
    %30 = arith.cmpi slt, %26, %29 : vector<64x1xi32>
    %c0_i32_13 = arith.constant 0 : i32
    %31 = arith.cmpi slt, %24, %c0_i32_13 : i32
    %32 = vector.broadcast %31 : i1 to vector<64x1xi1>
    %33 = vector.broadcast %32 : vector<64x1xi1> to vector<64x1xi1>
    %34 = arith.xori %30, %33 : vector<64x1xi1>
    %35 = arith.andi %34, %28 : vector<64x1xi1>
    %36 = vector.broadcast %24 : i32 to vector<64x1xi32>
    %37 = arith.addi %26, %36 : vector<64x1xi32>
    %38 = arith.select %35, %37, %26 : vector<64x1xi1>, vector<64x1xi32>
    %c6_i32 = arith.constant 6 : i32
    %39 = vector.broadcast %c6_i32 : i32 to vector<64x1xi32>
    %40 = arith.cmpi slt, %38, %39 : vector<64x1xi32>
    %c0_14 = arith.constant 0 : index
    %c0_15 = arith.constant 0 : index
    %41 = vector.load %arg3[%c0_14, %c0_15] : memref<1x512xf32, #tpu.memory_space<vmem>>, vector<1x512xf32>
    %42 = vector.broadcast %41 : vector<1x512xf32> to vector<64x512xf32>
    %43 = arith.addf %21, %42 : vector<64x512xf32>
    %cst_16 = arith.constant 0.000000e+00 : f32
    %44 = vector.broadcast %cst_16 : f32 to vector<64x512xf32>
    %45 = arith.maximumf %43, %44 : vector<64x512xf32>
    %cst_17 = arith.constant 0.000000e+00 : f32
    %46 = vector.shape_cast %40 : vector<64x1xi1> to vector<64x1xi1>
    %47 = vector.broadcast %46 : vector<64x1xi1> to vector<64x512xi1>
    %48 = vector.broadcast %cst_17 : f32 to vector<64x512xf32>
    %49 = arith.select %47, %45, %48 : vector<64x512xi1>, vector<64x512xf32>
    %50 = vector.extract_strided_slice %49 {offsets = [0, 0], sizes = [64, 256], strides = [1, 1]} : vector<64x512xf32> to vector<64x256xf32>
    %51 = vector.extract_strided_slice %49 {offsets = [0, 256], sizes = [64, 256], strides = [1, 1]} : vector<64x512xf32> to vector<64x256xf32>
    %52 = vector.shape_cast %50 : vector<64x256xf32> to vector<8x8x256xf32>
    %cst_18 = arith.constant dense<0xFF800000> : vector<8x256xf32>
    %53 = vector.multi_reduction <maximumf>, %52, %cst_18 [1] : vector<8x8x256xf32> to vector<8x256xf32>
    %54 = vector.shape_cast %51 : vector<64x256xf32> to vector<8x8x256xf32>
    %cst_19 = arith.constant dense<0xFF800000> : vector<8x256xf32>
    %55 = vector.multi_reduction <maximumf>, %54, %cst_19 [1] : vector<8x8x256xf32> to vector<8x256xf32>
    %56 = arith.mulf %50, %51 : vector<64x256xf32>
    %57 = vector.shape_cast %56 : vector<64x256xf32> to vector<8x8x256xf32>
    %cst_20 = arith.constant dense<0xFF800000> : vector<8x256xf32>
    %58 = vector.multi_reduction <maximumf>, %57, %cst_20 [1] : vector<8x8x256xf32> to vector<8x256xf32>
    %59 = arith.subf %50, %51 : vector<64x256xf32>
    %cst_21 = arith.constant 0xFF800000 : f32
    %60 = vector.shape_cast %40 : vector<64x1xi1> to vector<64x1xi1>
    %61 = vector.broadcast %60 : vector<64x1xi1> to vector<64x256xi1>
    %62 = vector.broadcast %cst_21 : f32 to vector<64x256xf32>
    %63 = arith.select %61, %59, %62 : vector<64x256xi1>, vector<64x256xf32>
    %64 = vector.shape_cast %63 : vector<64x256xf32> to vector<8x8x256xf32>
    %cst_22 = arith.constant dense<0xFF800000> : vector<8x256xf32>
    %65 = vector.multi_reduction <maximumf>, %64, %cst_22 [1] : vector<8x8x256xf32> to vector<8x256xf32>
    %c0_23 = arith.constant 0 : index
    %c0_24 = arith.constant 0 : index
    %66 = vector.load %arg4[%c0_23, %c0_24] : memref<4x256xf32, #tpu.memory_space<vmem>>, vector<1x256xf32>
    %67 = vector.broadcast %66 : vector<1x256xf32> to vector<8x256xf32>
    %68 = arith.mulf %53, %67 : vector<8x256xf32>
    %c1_25 = arith.constant 1 : index
    %c0_26 = arith.constant 0 : index
    %69 = vector.load %arg4[%c1_25, %c0_26] : memref<4x256xf32, #tpu.memory_space<vmem>>, vector<1x256xf32>
    %70 = vector.broadcast %69 : vector<1x256xf32> to vector<8x256xf32>
    %71 = arith.mulf %55, %70 : vector<8x256xf32>
    %72 = arith.addf %68, %71 : vector<8x256xf32>
    %c2_27 = arith.constant 2 : index
    %c0_28 = arith.constant 0 : index
    %73 = vector.load %arg4[%c2_27, %c0_28] : memref<4x256xf32, #tpu.memory_space<vmem>>, vector<1x256xf32>
    %74 = vector.broadcast %73 : vector<1x256xf32> to vector<8x256xf32>
    %75 = arith.mulf %65, %74 : vector<8x256xf32>
    %76 = arith.addf %72, %75 : vector<8x256xf32>
    %c3 = arith.constant 3 : index
    %c0_29 = arith.constant 0 : index
    %77 = vector.load %arg4[%c3, %c0_29] : memref<4x256xf32, #tpu.memory_space<vmem>>, vector<1x256xf32>
    %78 = vector.broadcast %77 : vector<1x256xf32> to vector<8x256xf32>
    %79 = arith.mulf %58, %78 : vector<8x256xf32>
    %80 = arith.addf %76, %79 : vector<8x256xf32>
    %cst_30 = arith.constant dense<0.000000e+00> : vector<8xf32>
    %81 = vector.multi_reduction <add>, %80, %cst_30 [1] : vector<8x256xf32> to vector<8xf32>
    %82 = vector.shape_cast %81 : vector<8xf32> to vector<8x1xf32>
    %c0_31 = arith.constant 0 : index
    %83 = memref.load %arg5[%c0_31] : memref<1xf32, #tpu.memory_space<smem>>
    %84 = vector.broadcast %83 : f32 to vector<8x1xf32>
    %85 = arith.addf %82, %84 : vector<8x1xf32>
    %86 = arith.negf %85 : vector<8x1xf32>
    %87 = math.exp %86 : vector<8x1xf32>
    %cst_32 = arith.constant 1.000000e+00 : f32
    %88 = vector.broadcast %cst_32 : f32 to vector<8x1xf32>
    %89 = arith.addf %88, %87 : vector<8x1xf32>
    %90 = arith.divf %88, %89 : vector<8x1xf32>
    %91 = tpu.iota {dimensions = array<i32: 0>} : vector<8x8xi32>
    %92 = tpu.iota {dimensions = array<i32: 1>} : vector<8x8xi32>
    %93 = arith.cmpi eq, %91, %92 : vector<8x8xi32>
    %cst_33 = arith.constant 0.000000e+00 : f32
    %94 = vector.shape_cast %90 : vector<8x1xf32> to vector<8x1xf32>
    %95 = vector.broadcast %94 : vector<8x1xf32> to vector<8x8xf32>
    %96 = vector.broadcast %cst_33 : f32 to vector<8x8xf32>
    %97 = arith.select %93, %95, %96 : vector<8x8xi1>, vector<8x8xf32>
    %cst_34 = arith.constant dense<0.000000e+00> : vector<8xf32>
    %98 = vector.multi_reduction <add>, %97, %cst_34 [0] : vector<8x8xf32> to vector<8xf32>
    %99 = vector.shape_cast %98 : vector<8xf32> to vector<1x8xf32>
    %100 = vector.shape_cast %99 : vector<1x8xf32> to vector<1x1x8xf32>
    %c0_35 = arith.constant 0 : index
    %c0_36 = arith.constant 0 : index
    %c0_37 = arith.constant 0 : index
    %101 = vector.load %arg6[%c0_35, %c0_36, %c0_37] : memref<1x1x8xf32, #tpu.memory_space<vmem>>, vector<1x1x8xf32>
    tpu.vector_store %arg6[%c0_35, %c0_36, %c0_37], %100 {strides = array<i32>} : memref<1x1x8xf32, #tpu.memory_space<vmem>>, vector<1x1x8xf32>,
    return
  }
  func.func @transform_0(%arg0: i32) -> (i32, i32, i32) {
    %c0_i32 = arith.constant 0 : i32
    %c0_i32_0 = arith.constant 0 : i32
    %c0_i32_1 = arith.constant 0 : i32
    return %arg0, %c0_i32, %c0_i32_0 : i32, i32, i32
  }
  func.func @transform_1(%arg0: i32) -> (i32, i32, i32) {
    %c0_i32 = arith.constant 0 : i32
    %c0_i32_0 = arith.constant 0 : i32
    %c0_i32_1 = arith.constant 0 : i32
    %c0_i32_2 = arith.constant 0 : i32
    return %c0_i32, %c0_i32_0, %c0_i32_1 : i32, i32, i32
  }
  func.func @transform_2(%arg0: i32) -> (i32, i32) {
    %c0_i32 = arith.constant 0 : i32
    %c0_i32_0 = arith.constant 0 : i32
    %c0_i32_1 = arith.constant 0 : i32
    return %c0_i32, %c0_i32_0 : i32, i32
  }
  func.func @transform_3(%arg0: i32) -> (i32, i32) {
    %c0_i32 = arith.constant 0 : i32
    %c0_i32_0 = arith.constant 0 : i32
    %c0_i32_1 = arith.constant 0 : i32
    return %c0_i32, %c0_i32_0 : i32, i32
  }
  func.func @transform_4(%arg0: i32) -> i32 {
    %c0_i32 = arith.constant 0 : i32
    %c0_i32_0 = arith.constant 0 : i32
    return %c0_i32 : i32
  }
  func.func @transform_5(%arg0: i32) -> (i32, i32, i32) {
    %c0_i32 = arith.constant 0 : i32
    %c0_i32_0 = arith.constant 0 : i32
    %c0_i32_1 = arith.constant 0 : i32
    return %arg0, %c0_i32, %c0_i32_0 : i32, i32, i32
  }
}

</mosaic_0001>

<bundles_post_ra>
// kernel: tpu_custom_call.1
= control target key start
LH: loop header
LB: loop body
LE: loop exit
PB: predicated region body
PF: predicated region fallthrough
CT: control target
= control target key end

     0   :  { %11 = vsyncpa [#allocation4], 0  ;;  %s3003_s0 = inlined_call_operand.hbm [shape: bf16[8,8,64], index: 0, kind: input, shape index: {}]   ;;  %s3004_s1 = inlined_call_operand.hbm [shape: bf16[3,64,512], index: 1, kind: input, shape index: {}]   ;;  %s3005_s2 = inlined_call_operand.vmem [shape: f32[1,512], index: 2, kind: input, shape index: {}]   ;;  %s3006_s3 = inlined_call_operand.hbm [shape: f32[4,256], index: 3, kind: input, shape index: {}]   ;;  %s3007_s4 = inlined_call_operand.<no memory space> [shape: f32[1], index: 4, kind: input, shape index: {}]   ;;  %s3008_s5 = inlined_call_operand.hbm [shape: f32[1,1,8], index: 5, kind: output, shape index: {}]  }
   0x1   :  { %12 = vsyncpa [#allocation7], 0 }
   0x2   :  { %13 = vsyncpa [#allocation5], 0  ;;  %s2156_s18 = smov [#allocation6]  }
   0x3   :  { %s31_s19 = sshll.u32 %s2156_s18, 4  ;;  %s32_s19 = int_to_ptr.vmem [resolvable:$true] %s31_s19 }
   0x4   :  { %s2078_s20 = scalar_lea.vmem %s32_s19, 6144  ;;  %p2083_p1 = scmp.lt.s32.totalorder %s32_s19, %s32_s19 }
   0x5   :  { %p2079_p0 = scmp.ne.s32.totalorder %s32_s19, %s2078_s20  ;;  %p2084_p2 = scmp.lt.s32.totalorder %s2078_s20, %s2078_s20 }
   0x7   :  { %p2085_p3 = por %p2084_p2, %p2083_p1 }
   0x9   :  { %p2086_p4 = pnand %p2085_p3, %p2079_p0 }
   0xb   :  { %2089 = shalt.err (!%p2086_p4)
}
   0xc   :  { %s2157_s21 = smov 256   ;;  %s2158_s22 = smov 16  }
   0xd   :  { %37 = dma.hbm_to_vmem [thread:$0]  %s3004_s1, 6144, %s32_s19, [#allocation7], %s2157_s21, %s2157_s21, %s2158_s22  }
   0xe   :  { %s2159_s25 = smov [#allocation3]  }
   0xf   :  { %s19_s26 = sshll.u32 %s2159_s25, 4  ;;  %s20_s26 = int_to_ptr.vmem [resolvable:$true] %s19_s26 }
  0x10   :  { %s2098_s27 = scalar_lea.vmem %s20_s26, 512  ;;  %p2103_p6 = scmp.lt.s32.totalorder %s20_s26, %s20_s26 }
  0x11   :  { %p2099_p5 = scmp.ne.s32.totalorder %s20_s26, %s2098_s27  ;;  %p2104_p7 = scmp.lt.s32.totalorder %s2098_s27, %s2098_s27 }
  0x13   :  { %p2105_p8 = por %p2104_p7, %p2103_p6 }
  0x15   :  { %p2106_p9 = pnand %p2105_p8, %p2099_p5 }
  0x17   :  { %2109 = shalt.err (!%p2106_p9)
}
  0x18   :  { %s2160_s28 = smov 64   ;;  %s2161_s29 = smov 4  }
  0x19   :  { %25 = dma.hbm_to_vmem [thread:$0]  %s3003_s0, 512, %s20_s26, [#allocation4], %s2160_s28, %s2160_s28, %s2161_s29  }
  0x1a   :  { %s2162_s7 = smov [#allocation8]  }
  0x1b   :  { %s46_s8 = sshll.u32 %s2162_s7, 4  ;;  %s47_s8 = int_to_ptr.vmem [resolvable:$true] %s46_s8 }
  0x1c   :  { %s2118_s1 = scalar_lea.vmem %s47_s8, 128  ;;  %p2123_p11 = scmp.lt.s32.totalorder %s47_s8, %s47_s8 }
  0x1d   :  { %p2119_p10 = scmp.ne.s32.totalorder %s47_s8, %s2118_s1  ;;  %p2124_p12 = scmp.lt.s32.totalorder %s2118_s1, %s2118_s1 }
  0x1f   :  { %p2125_p13 = por %p2124_p12, %p2123_p11 }
  0x21   :  { %p2126_p0 = pnand %p2125_p13, %p2119_p10 }
  0x23   :  { %2129 = shalt.err (!%p2126_p0)
}
  0x24   :  { %49 = dma.hbm_to_vmem [thread:$0]  %s3006_s3, 128, %s47_s8, [#allocation7]  }
  0x25   :  { %2150 = dma.done.wait [#allocation4], 512  }
  0x26   :  { %2151 = vsyncadd [#allocation4], 4294966784 }
  0x27   :  { %2152 = dma.done.wait [#allocation7], 6272  }
  0x28   :  { %2153 = vsyncadd [#allocation7], 4294961024  ;;  %v2163_v0 = vmov 0   ;;  %v1986_v1 = vld [vmem:[#allocation6 + $0xe4] ss:$16 sps:$4 sm:$0xff]   ;;  %v2208_v17 = vld [vmem:[#allocation3 + $0x8] sm:$0xff]  }
  0x29   :  { %274 = vmatprep.mubr.bf16.mxu0 %v2163_v0  ;;  %347 = vmatprep.mubr.bf16.mxu1 %v2163_v0  ;;  %v1988_v2 = vld [vmem:[#allocation6 + $0xec] ss:$16 sps:$4 sm:$0xff]   ;;  %v1990_v3 = vld [vmem:[#allocation6 + $0xe0] ss:$16 sps:$4 sm:$0xff]   ;;  %v1991_v4 = vld [vmem:[#allocation6 + $0xe8] ss:$16 sps:$4 sm:$0xff]   ;;  %v88_v21 = vunpack.c.l.bf16 %v2208_v17  ;;  %v89_v23 = vunpack.c.h.bf16 %v2208_v17 }
  0x2a   :  { %250 = vmatprep.subr.bf16.mxu0 %v1986_v1  ;;  %323 = vmatprep.subr.bf16.mxu1 %v1988_v2  ;;  %v1992_v5 = vld [vmem:[#allocation6 + $0xc4] ss:$16 sps:$4 sm:$0xff]   ;;  %v1994_v6 = vld [vmem:[#allocation6 + $0xcc] ss:$16 sps:$4 sm:$0xff]   ;;  %v1996_v7 = vld [vmem:[#allocation6 + $0xc0] ss:$16 sps:$4 sm:$0xff]  }
  0x2b   :  { %251 = vmatpush1.bf16.msra.mxu0 %v1990_v3  ;;  %324 = vmatpush1.bf16.msra.mxu1 %v1991_v4  ;;  %v1997_v8 = vld [vmem:[#allocation6 + $0xc8] ss:$16 sps:$4 sm:$0xff]   ;;  %v1998_v9 = vld [vmem:[#allocation6 + $0xa4] ss:$16 sps:$4 sm:$0xff]   ;;  %v2000_v10 = vld [vmem:[#allocation6 + $0xac] ss:$16 sps:$4 sm:$0xff]  }
  0x2c   :  { %252 = vmatprep.subr.bf16.mxu0 %v1992_v5  ;;  %325 = vmatprep.subr.bf16.mxu1 %v1994_v6  ;;  %v2002_v11 = vld [vmem:[#allocation6 + $0xa0] ss:$16 sps:$4 sm:$0xff]   ;;  %v2003_v12 = vld [vmem:[#allocation6 + $0xa8] ss:$16 sps:$4 sm:$0xff]   ;;  %v2004_v13 = vld [vmem:[#allocation6 + $0x84] ss:$16 sps:$4 sm:$0xff]  }
  0x2d   :  { %v2006_v14 = vld [vmem:[#allocation6 + $0x8c] ss:$16 sps:$4 sm:$0xff]   ;;  %v2008_v15 = vld [vmem:[#allocation6 + $0x80] ss:$16 sps:$4 sm:$0xff]   ;;  %vm102_vm0 = vcmask 1046528   ;;  %vm646_vm1 = vcmask 1045504  }
  0x2e   :  { %v2206_v16 = vld [vmem:[#allocation3] sm:$0xff]   ;;  %v2009_v20 = vld [vmem:[#allocation6 + $0x88] ss:$16 sps:$4 sm:$0xff]   ;;  %v2216_v28 = vld [vmem:[#allocation3 + $0x10] sm:$0xff]   ;;  %v106_v29 = vrot.slane %v88_v21, 1  ;;  %v650_v30 = vrot.slane %v88_v21, 2 }
  0x2f   :  { %253 = vmatpush1.bf16.msra.mxu0 %v1996_v7  ;;  %326 = vmatpush1.bf16.msra.mxu1 %v1997_v8  ;;  %v86_v18 = vunpack.c.l.bf16 %v2206_v16  ;;  %v87_v19 = vunpack.c.h.bf16 %v2206_v16  ;;  %v2013_v22 = vld [vmem:[#allocation6 + $0x64] ss:$16 sps:$4 sm:$0xff]   ;;  %v2016_v31 = vld [vmem:[#allocation6 + $0x6c] ss:$16 sps:$4 sm:$0xff]   ;;  %v90_v32 = vunpack.c.l.bf16 %v2216_v28  ;;  %vm229_vm2 = vcmask 523264  }
  0x30   :  { %254 = vmatprep.subr.bf16.mxu0 %v1998_v9  ;;  %327 = vmatprep.subr.bf16.mxu1 %v2000_v10  ;;  %v2011_v34 = vld [vmem:[#allocation6 + $0x60] ss:$16 sps:$4 sm:$0xff]   ;;  %v2014_v37 = vld [vmem:[#allocation6 + $0x68] ss:$16 sps:$4 sm:$0xff]   ;;  %v108_v38 = vrot.slane %v89_v23, 1  ;;  %v652_v45 = vrot.slane %v89_v23, 2  ;;  %v91_v47 = vunpack.c.h.bf16 %v2216_v28 }
  0x31   :  { %v2214_v24 = vrot.slane %v86_v18, 1  ;;  %v104_v25 = vrot.slane %v87_v19, 1  ;;  %v647_v26 = vrot.slane %v86_v18, 2  ;;  %v648_v27 = vrot.slane %v87_v19, 2  ;;  %v2019_v42 = vld [vmem:[#allocation6 + $0x44] ss:$16 sps:$4 sm:$0xff]  }
  0x32   :  { %v110_v39 = vrot.slane %v90_v32, 1  ;;  %v2224_v43 = vld [vmem:[#allocation3 + $0x18] sm:$0xff]   ;;  %v653_v49 = vsel %vm646_vm1, %v650_v30, %v652_v45  ;;  %v654_v50 = vrot.slane %v90_v32, 2  ;;  %v109_v51 = vsel %vm102_vm0, %v106_v29, %v108_v38  ;;  %v2017_v53 = vld [vmem:[#allocation6 + $0x40] ss:$16 sps:$4 sm:$0xff]  }
  0x33   :  { %255 = vmatpush1.bf16.msra.mxu0 %v2002_v11  ;;  %328 = vmatpush1.bf16.msra.mxu1 %v2003_v12  ;;  %v105_v33 = vsel %vm102_vm0, %v2214_v24, %v104_v25  ;;  %v649_v35 = vsel %vm646_vm1, %v647_v26, %v648_v27  ;;  %v107_v36 = vsel %vm102_vm0, %v104_v25, %v106_v29  ;;  %v2022_v46 = vld [vmem:[#allocation6 + $0x4c] ss:$16 sps:$4 sm:$0xff]   ;;  %v92_v48 = vunpack.c.l.bf16 %v2224_v43  ;;  %v2020_v54 = vld [vmem:[#allocation6 + $0x48] ss:$16 sps:$4 sm:$0xff]   ;;  %v2025_v55 = vld [vmem:[#allocation6 + $0x24] ss:$16 sps:$4 sm:$0xff]  }
  0x34   :  { %256 = vmatprep.subr.bf16.mxu0 %v2004_v13  ;;  %329 = vmatprep.subr.bf16.mxu1 %v2006_v14  ;;  %v651_v40 = vsel %vm646_vm1, %v648_v27, %v650_v30  ;;  %v128_v41 = vpack.c.bf16 %v107_v36, %v105_v33  ;;  %v111_v52 = vsel %vm102_vm0, %v108_v38, %v110_v39  ;;  %v93_v56 = vunpack.c.h.bf16 %v2224_v43  ;;  %v2028_v57 = vld [vmem:[#allocation6 + $0x2c] ss:$16 sps:$4 sm:$0xff]   ;;  %v2023_v4 = vld [vmem:[#allocation6 + $0x20] ss:$16 sps:$4 sm:$0xff]   ;;  %v2026_v5 = vld [vmem:[#allocation6 + $0x28] ss:$16 sps:$4 sm:$0xff]  }
  0x35   :  { %v2226_v44 = vpack.c.bf16 %v651_v40, %v649_v35  ;;  %v655_v58 = vsel %vm646_vm1, %v652_v45, %v654_v50  ;;  %v656_v59 = vrot.slane %v91_v47, 2  ;;  %v658_v60 = vrot.slane %v92_v48, 2  ;;  %v2031_v9 = vld [vmem:[#allocation6 + $0x4] ss:$16 sps:$4 sm:$0xff]   ;;  %v2034_v12 = vld [vmem:[#allocation6 + $0xc] ss:$16 sps:$4 sm:$0xff]  }
  0x36   :  { %v660_v61 = vrot.slane %v93_v56, 2  ;;  %v129_v62 = vpack.c.bf16 %v111_v52, %v109_v51  ;;  %v112_v63 = vrot.slane %v91_v47, 1  ;;  %v2239_v1 = vpack.c.bf16 %v655_v58, %v653_v49  ;;  %v2032_v18 = vld [vmem:[#allocation6 + $0x8] ss:$16 sps:$4 sm:$0xff]   ;;  %v2037_v19 = vld [vmem:[#allocation6 + $0x164] ss:$16 sps:$4 sm:$0xff]  }
  0x37   :  { %257 = vmatpush1.bf16.msra.mxu0 %v2008_v15  ;;  %330 = vmatpush1.bf16.msra.mxu1 %v2009_v20  ;;  %v657_v2 = vsel %vm646_vm1, %v654_v50, %v656_v59  ;;  %v114_v3 = vrot.slane %v92_v48, 1  ;;  %v659_v6 = vsel %vm646_vm1, %v656_v59, %v658_v60  ;;  %v2029_v15 = vld [vmem:[#allocation6] ss:$16 sps:$4 sm:$0xff]   ;;  %v2040_v20 = vld [vmem:[#allocation6 + $0x16c] ss:$16 sps:$4 sm:$0xff]   ;;  %vm1822_vm11 = vcmask 1041409  }
  0x38   :  { %508 = vmatprep.subr.bf16.mxu0 %v2013_v22  ;;  %581 = vmatprep.subr.bf16.mxu1 %v2016_v31  ;;  %v661_v7 = vsel %vm646_vm1, %v658_v60, %v660_v61  ;;  %v671_v8 = vsel %vm646_vm1, %v660_v61, %v647_v26  ;;  %v2245_v10 = vpack.c.bf16 %v659_v6, %v657_v2  ;;  %v116_v22 = vrot.slane %v93_v56, 1  ;;  %v2035_v27 = vld [vmem:[#allocation6 + $0x160] ss:$16 sps:$4 sm:$0xff]   ;;  %v2038_v29 = vld [vmem:[#allocation6 + $0x168] ss:$16 sps:$4 sm:$0xff]  }
  0x39   :  { %v2247_v11 = vpack.c.bf16 %v671_v8, %v661_v7  ;;  %v113_v13 = vsel %vm102_vm0, %v110_v39, %v112_v63  ;;  %v115_v14 = vsel %vm102_vm0, %v112_v63, %v114_v3  ;;  %v2044_v30 = vld [vmem:[#allocation6 + $0x144] ss:$16 sps:$4 sm:$0xff]   ;;  %v2047_v31 = vld [vmem:[#allocation6 + $0x14c] ss:$16 sps:$4 sm:$0xff]   ;;  %v2045_v32 = vld [vmem:[#allocation6 + $0x148] ss:$16 sps:$4 sm:$0xff]  }
  0x3a   :  { %1916 = vmatmul.mubr.msk.bf16.vlgmr.msra.gmra.mxu0 %vm229_vm2, %v128_v41  ;;  %1920 = vmatmul.mubr.msk.bf16.vlgmr.msra.gmra.mxu1 %vm229_vm2, %v128_v41  ;;  %v130_v21 = vpack.c.bf16 %v115_v14, %v113_v13  ;;  %v117_v23 = vsel %vm102_vm0, %v114_v3, %v116_v22  ;;  %v127_v25 = vsel %vm102_vm0, %v116_v22, %v2214_v24  ;;  %v2042_v24 = vld [vmem:[#allocation6 + $0x140] ss:$16 sps:$4 sm:$0xff]   ;;  %v2051_v33 = vld [vmem:[#allocation6 + $0x124] ss:$16 sps:$4 sm:$0xff]   ;;  %v2052_v36 = vld [vmem:[#allocation6 + $0x128] ss:$16 sps:$4 sm:$0xff]  }
  0x3b   :  { %509 = vmatpush1.bf16.msra.mxu0 %v2011_v34  ;;  %582 = vmatpush1.bf16.msra.mxu1 %v2014_v37  ;;  %v131_v26 = vpack.c.bf16 %v127_v25, %v117_v23  ;;  %v2054_v34 = vld [vmem:[#allocation6 + $0x12c] ss:$16 sps:$4 sm:$0xff]   ;;  %v2049_v35 = vld [vmem:[#allocation6 + $0x120] ss:$16 sps:$4 sm:$0xff]   ;;  %v2058_v37 = vld [vmem:[#allocation6 + $0x104] ss:$16 sps:$4 sm:$0xff]  }
  0x3c   :  { %284 = vmatprep.mubr.bf16.mxu0 %v2163_v0  ;;  %357 = vmatprep.mubr.bf16.mxu1 %v2163_v0  ;;  %v2056_v38 = vld [vmem:[#allocation6 + $0x100] ss:$16 sps:$4 sm:$0xff]   ;;  %v2059_v39 = vld [vmem:[#allocation6 + $0x108] ss:$16 sps:$4 sm:$0xff]   ;;  %vm1825_vm12 = vcmask 1042434   ;;  %vm1828_vm13 = vcmask 1043459  }
  0x3d   :  { %510 = vmatprep.subr.bf16.mxu0 %v2019_v42  ;;  %583 = vmatprep.subr.bf16.mxu1 %v2022_v46  ;;  %vm1831_vm14 = vcmask 1044484   ;;  %vm1834_vm15 = vcmask 1045509   ;;  %vm1837_vm0 = vcmask 1046534   ;;  %vm1840_vm1 = vcmask 1047559  }
  0x3f   :  { %511 = vmatpush1.bf16.msra.mxu0 %v2017_v53  ;;  %584 = vmatpush1.bf16.msra.mxu1 %v2020_v54 }
  0x40   :  { %512 = vmatprep.subr.bf16.mxu0 %v2025_v55  ;;  %585 = vmatprep.subr.bf16.mxu1 %v2028_v57 }
  0x42   :  { %1917 = vmatmul.mubr.msk.bf16.gmra.mxu0 %vm229_vm2, %v129_v62  ;;  %1921 = vmatmul.mubr.msk.bf16.gmra.mxu1 %vm229_vm2, %v129_v62 }
  0x43   :  { %294 = vmatprep.mubr.bf16.mxu0 %v2163_v0  ;;  %367 = vmatprep.mubr.bf16.mxu1 %v2163_v0 }
  0x44   :  { %513 = vmatpush1.bf16.msra.mxu0 %v2023_v4  ;;  %586 = vmatpush1.bf16.msra.mxu1 %v2026_v5 }
  0x45   :  { %514 = vmatprep.subr.bf16.mxu0 %v2031_v9  ;;  %587 = vmatprep.subr.bf16.mxu1 %v2034_v12 }
  0x48   :  { %515 = vmatpush1.bf16.msra.mxu0 %v2029_v15  ;;  %588 = vmatpush1.bf16.msra.mxu1 %v2032_v18 }
  0x49   :  { %793 = vmatprep.subr.bf16.mxu0 %v2037_v19  ;;  %866 = vmatprep.subr.bf16.mxu1 %v2040_v20  ;;  %v3009_v20 = vlaneseq }
  0x4a   :  { %1918 = vmatmul.mubr.msk.bf16.gmra.mxu0 %vm229_vm2, %v130_v21  ;;  %1922 = vmatmul.mubr.msk.bf16.gmra.mxu1 %vm229_vm2, %v130_v21 }
  0x4b   :  { %304 = vmatprep.mubr.bf16.mxu0 %v2163_v0  ;;  %377 = vmatprep.mubr.bf16.mxu1 %v2163_v0 }
  0x52   :  { %1919 = vmatmul.mubr.msk.bf16.gmra.mxu0 %vm229_vm2, %v131_v26  ;;  %1923 = vmatmul.mubr.msk.bf16.gmra.mxu1 %vm229_vm2, %v131_v26  ;;  %v2397_v26 = vshrl.u32 %v3009_v20, 7  ;;  %v1671_v20 = vld [vmem:[#allocation8 + $0x1] ss:$4 sm:$0x3] }
  0x53   :  { %532 = vmatprep.mubr.bf16.mxu0 %v2163_v0  ;;  %605 = vmatprep.mubr.bf16.mxu1 %v2163_v0 }
  0x54   :  { %3035 = vst [vmem:[#allocation27_spill] sm:$0xff] %v2397_v26 }
  0x5a   :  { %1944 = vmatmul.mubr.msk.bf16.vlgmr.msra.gmra.mxu0 %vm229_vm2, %v2206_v16  ;;  %1948 = vmatmul.mubr.msk.bf16.vlgmr.msra.gmra.mxu1 %vm229_vm2, %v2206_v16  ;;  %v2061_v16 = vld [vmem:[#allocation6 + $0x10c] ss:$16 sps:$4 sm:$0xff]  }
  0x5b   :  { %794 = vmatpush1.bf16.msra.mxu0 %v2035_v27  ;;  %867 = vmatpush1.bf16.msra.mxu1 %v2038_v29 }
  0x5c   :  { %542 = vmatprep.mubr.bf16.mxu0 %v2163_v0  ;;  %615 = vmatprep.mubr.bf16.mxu1 %v2163_v0 }
  0x5d   :  { %795 = vmatprep.subr.bf16.mxu0 %v2044_v30  ;;  %868 = vmatprep.subr.bf16.mxu1 %v2047_v31 }
  0x5f   :  { %796 = vmatpush1.bf16.msra.mxu0 %v2042_v24  ;;  %869 = vmatpush1.bf16.msra.mxu1 %v2045_v32  ;;  %v1080_v24 = vsub.s32 0, %v2397_v26  ;;  %v1076_v32 = vld [vmem:[%s3005_s2] sm:$0xf] }
  0x60   :  { %797 = vmatprep.subr.bf16.mxu0 %v2051_v33  ;;  %870 = vmatprep.subr.bf16.mxu1 %v2054_v34  ;;  %v1088_v33 = vsub.s32 2, %v2397_v26  ;;  %v1084_v34 = vsub.s32 1, %v2397_v26 }
  0x62   :  { %1945 = vmatmul.mubr.msk.bf16.gmra.mxu0 %vm229_vm2, %v2208_v17  ;;  %1949 = vmatmul.mubr.msk.bf16.gmra.mxu1 %vm229_vm2, %v2208_v17 }
  0x63   :  { %552 = vmatprep.mubr.bf16.mxu0 %v2163_v0  ;;  %625 = vmatprep.mubr.bf16.mxu1 %v2163_v0 }
  0x64   :  { %798 = vmatpush1.bf16.msra.mxu0 %v2049_v35  ;;  %871 = vmatpush1.bf16.msra.mxu1 %v2052_v36  ;;  %v1092_v35 = vsub.s32 3, %v2397_v26 }
  0x65   :  { %799 = vmatprep.subr.bf16.mxu0 %v2058_v37  ;;  %872 = vmatprep.subr.bf16.mxu1 %v2061_v16  ;;  %v976_v16 = vand.u32 7, %v2397_v26 }
  0x67   :  { %vm2467_vm3 = vcmp.lt.s32.totalorder %v976_v16, 6 }
  0x68   :  { %800 = vmatpush1.bf16.msra.mxu0 %v2056_v38  ;;  %873 = vmatpush1.bf16.msra.mxu1 %v2059_v39  ;;  %v1642_v38 = vld [vmem:[#allocation8] ss:$4 sm:$0x3]  ;;  %v2418_v39 = vadd.s32 8, %v2397_v26 }
  0x6a   :  { %1946 = vmatmul.mubr.msk.bf16.gmra.mxu0 %vm229_vm2, %v2216_v28  ;;  %1950 = vmatmul.mubr.msk.bf16.gmra.mxu1 %vm229_vm2, %v2216_v28 }
  0x6b   :  { %562 = vmatprep.mubr.bf16.mxu0 %v2163_v0  ;;  %635 = vmatprep.mubr.bf16.mxu1 %v2163_v0 }
  0x72   :  { %1947 = vmatmul.mubr.msk.bf16.gmra.mxu0 %vm229_vm2, %v2224_v43  ;;  %1951 = vmatmul.mubr.msk.bf16.gmra.mxu1 %vm229_vm2, %v2224_v43 }
  0x73   :  { %817 = vmatprep.mubr.bf16.mxu0 %v2163_v0  ;;  %890 = vmatprep.mubr.bf16.mxu1 %v2163_v0 }
  0x7a   :  { %1968 = vmatmul.mubr.msk.bf16.vlgmr.msra.gmra.mxu0 %vm229_vm2, %v2226_v44  ;;  %1972 = vmatmul.mubr.msk.bf16.vlgmr.msra.gmra.mxu1 %vm229_vm2, %v2226_v44 }
  0x7b   :  { %827 = vmatprep.mubr.bf16.mxu0 %v2163_v0  ;;  %900 = vmatprep.mubr.bf16.mxu1 %v2163_v0 }
  0x82   :  { %1969 = vmatmul.mubr.msk.bf16.gmra.mxu0 %vm229_vm2, %v2239_v1  ;;  %1973 = vmatmul.mubr.msk.bf16.gmra.mxu1 %vm229_vm2, %v2239_v1 }
  0x83   :  { %837 = vmatprep.mubr.bf16.mxu0 %v2163_v0  ;;  %910 = vmatprep.mubr.bf16.mxu1 %v2163_v0 }
  0x8a   :  { %1970 = vmatmul.mubr.msk.bf16.gmra.mxu0 %vm229_vm2, %v2245_v10  ;;  %1974 = vmatmul.mubr.msk.bf16.gmra.mxu1 %vm229_vm2, %v2245_v10 }
  0x8b   :  { %847 = vmatprep.mubr.bf16.mxu0 %v2163_v0  ;;  %920 = vmatprep.mubr.bf16.mxu1 %v2163_v0 }
  0x92   :  { %1971 = vmatmul.mubr.msk.bf16.gmra.mxu0 %vm229_vm2, %v2247_v11  ;;  %1975 = vmatmul.mubr.msk.bf16.gmra.mxu1 %vm229_vm2, %v2247_v11 }
  0xfa   :  { %v2312_v17 = vpop.f32.mrf.mxu0  ;;  %v2314_v28 = vpop.f32.mrf.mxu1 }
  0xfc   :  { %v2316_v40 = vpop.f32.mrf.mxu0  ;;  %v2318_v41 = vpop.f32.mrf.mxu1 }
  0xfe   :  { %v2320_v42 = vpop.f32.mrf.mxu0  ;;  %v2322_v43 = vpop.f32.mrf.mxu1 }
 0x100   :  { %v2324_v44 = vpop.f32.mrf.mxu0  ;;  %v2326_v0 = vpop.f32.mrf.mxu1 }
 0x102   :  { %v2328_v45 = vpop.f32.mrf.mxu0  ;;  %v2330_v46 = vpop.f32.mrf.mxu1 }
 0x104   :  { %v2332_v47 = vpop.f32.mrf.mxu0  ;;  %v2334_v48 = vpop.f32.mrf.mxu1 }
 0x106   :  { %v2336_v49 = vpop.f32.mrf.mxu0  ;;  %v2338_v50 = vpop.f32.mrf.mxu1 }
 0x108   :  { %v2340_v51 = vpop.f32.mrf.mxu0  ;;  %v2342_v52 = vpop.f32.mrf.mxu1 }
 0x10a   :  { %v2344_v53 = vpop.f32.mrf.mxu0  ;;  %v2346_v54 = vpop.f32.mrf.mxu1 }
 0x10c   :  { %v2348_v55 = vpop.f32.mrf.mxu0  ;;  %v2350_v56 = vpop.f32.mrf.mxu1 }
 0x10d   :  { %3021 = vst [vmem:[#allocation13_spill] sm:$0xff] %v2348_v55  ;;  %3022 = vst [vmem:[#allocation14_spill] sm:$0xff] %v2350_v56  ;;  %v2442_v56 = vrot.slane %v1671_v20, %v1080_v24 }
 0x10e   :  { %v2352_v57 = vpop.f32.mrf.mxu0  ;;  %v2354_v58 = vpop.f32.mrf.mxu1 }
 0x10f   :  { %3023 = vst [vmem:[#allocation15_spill] sm:$0xff] %v2352_v57  ;;  %3024 = vst [vmem:[#allocation16_spill] sm:$0xff] %v2354_v58  ;;  %v2438_v58 = vadd.s32 40, %v2397_v26 }
 0x110   :  { %v2356_v59 = vpop.f32.mrf.mxu0  ;;  %v2358_v60 = vpop.f32.mrf.mxu1  ;;  %3045 = vst [vmem:[#allocation37_spill] sm:$0xff] %v2442_v56 }
 0x111   :  { %3025 = vst [vmem:[#allocation17_spill] sm:$0xff] %v2356_v59  ;;  %3026 = vst [vmem:[#allocation18_spill] sm:$0xff] %v2358_v60  ;;  %v2431_v60 = vrot.slane %v1076_v32, %v1088_v33  ;;  %v2433_v59 = vrot.slane %v1076_v32, %v1084_v34  ;;  %v2449_v33 = vrot.slane %v1642_v38, %v1084_v34 }
 0x112   :  { %v2360_v61 = vpop.f32.mrf.mxu0  ;;  %v2362_v62 = vpop.f32.mrf.mxu1 }
 0x113   :  { %3027 = vst [vmem:[#allocation19_spill] sm:$0xff] %v2360_v61  ;;  %3028 = vst [vmem:[#allocation20_spill] sm:$0xff] %v2362_v62  ;;  %v2426_v62 = vadd.s32 24, %v2397_v26  ;;  %v2429_v61 = vadd.s32 32, %v2397_v26 }
 0x114   :  { %v2364_v63 = vpop.f32.mrf.mxu0  ;;  %v2366_v1 = vpop.f32.mrf.mxu1  ;;  %3041 = vst [vmem:[#allocation33_spill] sm:$0xff] %v2431_v60  ;;  %3042 = vst [vmem:[#allocation34_spill] sm:$0xff] %v2433_v59  ;;  %v2451_v59 = vrot.slane %v1671_v20, %v1084_v34 }
 0x115   :  { %3029 = vst [vmem:[#allocation21_spill] sm:$0xff] %v2364_v63  ;;  %3030 = vst [vmem:[#allocation22_spill] sm:$0xff] %v2366_v1  ;;  %v1716_v1 = vld [vmem:[#allocation8 + $0x2] ss:$4 sm:$0x3]  ;;  %v2423_v63 = vadd.s32 16, %v2397_v26 }
 0x116   :  { %v2368_v2 = vpop.f32.mrf.mxu0  ;;  %v2370_v3 = vpop.f32.mrf.mxu1  ;;  %v2455_v60 = vrot.slane %v1716_v1, %v1084_v34 }
 0x117   :  { %3031 = vst [vmem:[#allocation23_spill] sm:$0xff] %v2368_v2  ;;  %3032 = vst [vmem:[#allocation24_spill] sm:$0xff] %v2370_v3  ;;  %v2420_v2 = vrot.slane %v1076_v32, %v1080_v24 }
 0x118   :  { %v2372_v4 = vpop.f32.mrf.mxu0  ;;  %v2374_v5 = vpop.f32.mrf.mxu1 }
 0x119   :  { %3033 = vst [vmem:[#allocation25_spill] sm:$0xff] %v2372_v4  ;;  %3034 = vst [vmem:[#allocation26_spill] sm:$0xff] %v2374_v5  ;;  %v1761_v5 = vld [vmem:[#allocation8 + $0x3] ss:$4 sm:$0x3] }
 0x11a   :  { %v534_v6 = vpop.f32.mrf.mxu0  ;;  %v607_v7 = vpop.f32.mrf.mxu1  ;;  %3040 = vst [vmem:[#allocation32_spill] sm:$0xff] %v2420_v2 }
 0x11b   :  { %v535_v55 = vadd.f32 %v534_v6, %v2312_v17  ;;  %v2472_v17 = vadd.s32 48, %v2397_v26 }
 0x11c   :  { %v536_v8 = vpop.f32.mrf.mxu0  ;;  %v609_v9 = vpop.f32.mrf.mxu1 }
 0x11d   :  { %3050 = vst [vmem:[#allocation40_spill] sm:$0xff] %v2472_v17 }
 0x11e   :  { %v538_v10 = vpop.f32.mrf.mxu0  ;;  %v611_v11 = vpop.f32.mrf.mxu1 }
 0x120   :  { %v2376_v12 = vpop.f32.mrf.mxu0  ;;  %v2378_v13 = vpop.f32.mrf.mxu1 }
 0x122   :  { %v2380_v14 = vpop.f32.mrf.mxu0  ;;  %v2382_v15 = vpop.f32.mrf.mxu1 }
 0x124   :  { %v2384_v18 = vpop.f32.mrf.mxu0  ;;  %v2386_v19 = vpop.f32.mrf.mxu1 }
 0x126   :  { %v2388_v21 = vpop.f32.mrf.mxu0  ;;  %v2390_v22 = vpop.f32.mrf.mxu1 }
 0x128   :  { %v2392_v23 = vpop.f32.mrf.mxu0  ;;  %v2394_v25 = vpop.f32.mrf.mxu1 }
 0x12a   :  { %v2399_v27 = vpop.f32.mrf.mxu0  ;;  %v2401_v29 = vpop.f32.mrf.mxu1 }
 0x12b   :  { %3036 = vst [vmem:[#allocation28_spill] sm:$0xff] %v2401_v29  ;;  %v2447_v29 = vrot.slane %v1716_v1, %v1080_v24  ;;  %v612_v1 = vadd.f32 %v611_v11, %v2322_v43  ;;  %v2492_v43 = vadd.f32 %v2384_v18, %v2332_v47  ;;  %v2512_v47 = vadd.f32 %v2394_v25, %v2342_v52  ;;  %v3054_v11 = vld [vmem:[#allocation14_spill] sm:$0xff]  ;;  %v3058_v18 = vld [vmem:[#allocation16_spill] sm:$0xff] }
 0x12c   :  { %v2403_v30 = vpop.f32.mrf.mxu0  ;;  %v2405_v31 = vpop.f32.mrf.mxu1 }
 0x12d   :  { %3037 = vst [vmem:[#allocation29_spill] sm:$0xff] %v2403_v30  ;;  %3038 = vst [vmem:[#allocation30_spill] sm:$0xff] %v2405_v31  ;;  %v2440_v31 = vrot.slane %v1642_v38, %v1080_v24  ;;  %v2444_v30 = vrot.slane %v1761_v5, %v1080_v24  ;;  %v608_v24 = vadd.f32 %v607_v7, %v2314_v28 }
 0x12e   :  { %v558_v36 = vpop.f32.mrf.mxu0  ;;  %v2414_v37 = vpop.f32.mrf.mxu1  ;;  %v537_v38 = vadd.f32 %v536_v8, %v2316_v40  ;;  %v2476_v28 = vadd.f32 %v2376_v12, %v2324_v44  ;;  %v2480_v40 = vadd.f32 %v2378_v13, %v2326_v0  ;;  %v2496_v44 = vadd.f32 %v2386_v19, %v2334_v48  ;;  %v3056_v13 = vld [vmem:[#allocation15_spill] sm:$0xff] }
 0x12f   :  { %3039 = vst [vmem:[#allocation31_spill] sm:$0xff] %v2414_v37  ;;  %v2435_v37 = vrot.slane %v1076_v32, %v1092_v35  ;;  %3044 = vst [vmem:[#allocation36_spill] sm:$0xff] %v2440_v31  ;;  %v2453_v32 = vrot.slane %v1761_v5, %v1084_v34  ;;  %v610_v5 = vadd.f32 %v609_v9, %v2318_v41 }
 0x130   :  { %v560_v4 = vpop.f32.mrf.mxu0  ;;  %v633_v3 = vpop.f32.mrf.mxu1  ;;  %3046 = vst [vmem:[#allocation38_spill] sm:$0xff] %v2444_v30  ;;  %v2484_v41 = vadd.f32 %v2380_v14, %v2328_v45  ;;  %v2500_v0 = vadd.f32 %v2388_v21, %v2336_v49  ;;  %v2504_v45 = vadd.f32 %v2390_v22, %v2338_v50  ;;  %v2516_v48 = vadd.f32 %v2399_v27, %v2344_v53  ;;  %v3052_v50 = vld [vmem:[#allocation13_spill] sm:$0xff]  ;;  %v3063_v27 = vld [vmem:[#allocation18_spill] sm:$0xff] }
 0x131   :  { %3043 = vst [vmem:[#allocation35_spill] sm:$0xff] %v2435_v37  ;;  %3047 = vst [vmem:[#allocation39_spill] sm:$0xff] %v2453_v32  ;;  %v539_v32 = vadd.f32 %v538_v10, %v2320_v42  ;;  %v2488_v42 = vadd.f32 %v2382_v15, %v2330_v46  ;;  %v2508_v46 = vadd.f32 %v2392_v23, %v2340_v51  ;;  %v3081_v30 = vld [vmem:[#allocation34_spill] sm:$0xff] }
 0x132   :  { %v564_v2 = vpop.f32.mrf.mxu0  ;;  %v637_v57 = vpop.f32.mrf.mxu1  ;;  %v3051_v49 = vld [vmem:[#allocation28_spill] sm:$0xff]  ;;  %v2531_v14 = vadd.f32 %v558_v36, %v3056_v13  ;;  %v2542_v16 = vadd.f32 %v633_v3, %v3063_v27 }
 0x133   :  { %v2520_v8 = vadd.f32 %v3051_v49, %v2346_v54  ;;  %v3061_v54 = vld [vmem:[#allocation17_spill] sm:$0xff]  ;;  %v3065_v49 = vld [vmem:[#allocation19_spill] sm:$0xff]  ;;  %v3067_v36 = vld [vmem:[#allocation20_spill] sm:$0xff] }
 0x134   :  { %v566_v35 = vpop.f32.mrf.mxu0  ;;  %v639_v37 = vpop.f32.mrf.mxu1  ;;  %v3053_v9 = vld [vmem:[#allocation29_spill] sm:$0xff]  ;;  %v3055_v12 = vld [vmem:[#allocation30_spill] sm:$0xff]  ;;  %3057 = vst [vmem:[#allocation28_spill] sm:$0xff] %v2531_v14  ;;  %v2539_v22 = vadd.f32 %v560_v4, %v3061_v54  ;;  %3064 = vst [vmem:[#allocation14_spill] sm:$0xff] %v2542_v16 }
 0x135   :  { %v2524_v10 = vadd.f32 %v3053_v9, %v3052_v50  ;;  %v2528_v51 = vadd.f32 %v3055_v12, %v3054_v11  ;;  %v2545_v50 = vadd.f32 %v564_v2, %v3065_v49  ;;  %v2548_v9 = vadd.f32 %v637_v57, %v3067_v36  ;;  %v3069_v11 = vld [vmem:[#allocation21_spill] sm:$0xff]  ;;  %v3077_v27 = vld [vmem:[#allocation24_spill] sm:$0xff] }
 0x136   :  { %v568_v34 = vpop.f32.mrf.mxu0  ;;  %v641_v31 = vpop.f32.mrf.mxu1  ;;  %v3059_v19 = vld [vmem:[#allocation31_spill] sm:$0xff]  ;;  %3062 = vst [vmem:[#allocation29_spill] sm:$0xff] %v2539_v22  ;;  %v2551_v12 = vadd.f32 %v566_v35, %v3069_v11  ;;  %v3072_v4 = vld [vmem:[#allocation33_spill] sm:$0xff]  ;;  %v3088_v17 = vld [vmem:[#allocation36_spill] sm:$0xff] }
 0x137   :  { %v2536_v21 = vadd.f32 %v3059_v19, %v3058_v18  ;;  %3066 = vst [vmem:[#allocation30_spill] sm:$0xff] %v2545_v50  ;;  %3068 = vst [vmem:[#allocation15_spill] sm:$0xff] %v2548_v9  ;;  %v3071_v19 = vld [vmem:[#allocation32_spill] sm:$0xff]  ;;  %v2562_v57 = vadd.f32 %v641_v31, %v3077_v27  ;;  %v3079_v49 = vld [vmem:[#allocation25_spill] sm:$0xff] }
 0x138   :  { %v570_v6 = vpop.f32.mrf.mxu0  ;;  %v643_v7 = vpop.f32.mrf.mxu1  ;;  %3070 = vst [vmem:[#allocation16_spill] sm:$0xff] %v2551_v12 }
 0x139   :  { %3060 = vst [vmem:[#allocation13_spill] sm:$0xff] %v2536_v21  ;;  %3078 = vst [vmem:[#allocation18_spill] sm:$0xff] %v2562_v57  ;;  %v2565_v35 = vadd.f32 %v570_v6, %v3079_v49 }
 0x13a   :  { %v819_v52 = vpop.f32.mrf.mxu0  ;;  %v892_v15 = vpop.f32.mrf.mxu1 }
 0x13b   :  { %v931_v23 = vadd.f32 %v819_v52, %v535_v55  ;;  %v933_v25 = vadd.f32 %v892_v15, %v608_v24  ;;  %v3073_v52 = vld [vmem:[#allocation22_spill] sm:$0xff]  ;;  %v3075_v15 = vld [vmem:[#allocation23_spill] sm:$0xff]  ;;  %3080 = vst [vmem:[#allocation19_spill] sm:$0xff] %v2565_v35 }
 0x13c   :  { %v821_v13 = vpop.f32.mrf.mxu0  ;;  %v894_v18 = vpop.f32.mrf.mxu1  ;;  %v2556_v3 = vadd.f32 %v639_v37, %v3073_v52  ;;  %v2559_v2 = vadd.f32 %v568_v34, %v3075_v15  ;;  %v2573_v52 = vadd.s32 56, %v2397_v26 }
 0x13d   :  { %v1098_v53 = vadd.f32 %v3071_v19, %v931_v23  ;;  %v1100_v54 = vadd.f32 %v3072_v4, %v933_v25  ;;  %v932_v55 = vadd.f32 %v821_v13, %v537_v38  ;;  %v934_v24 = vadd.f32 %v894_v18, %v610_v5  ;;  %v3082_v38 = vld [vmem:[#allocation35_spill] sm:$0xff]  ;;  %v3083_v13 = vld [vmem:[#allocation26_spill] sm:$0xff] }
 0x13e   :  { %3074 = vst [vmem:[#allocation31_spill] sm:$0xff] %v2556_v3  ;;  %3076 = vst [vmem:[#allocation17_spill] sm:$0xff] %v2559_v2  ;;  %v823_v36 = vpop.f32.mrf.mxu0  ;;  %v896_v11 = vpop.f32.mrf.mxu1  ;;  %v2570_v37 = vadd.f32 %v643_v7, %v3083_v13 }
 0x13f   :  { %v1130_v20 = vmax.f32 %v1098_v53, 0.0  ;;  %v1132_v23 = vmax.f32 %v1100_v54, 0.0  ;;  %v1099_v25 = vadd.f32 %v3081_v30, %v932_v55  ;;  %v1101_v5 = vadd.f32 %v3082_v38, %v934_v24 }
 0x140   :  { %3084 = vst [vmem:[#allocation20_spill] sm:$0xff] %v2570_v37  ;;  %v935_v18 = vadd.f32 %v823_v36, %v539_v32  ;;  %v937_v34 = vadd.f32 %v896_v11, %v612_v1 }
 0x141   :  { %v1178_v31 = vsel %vm2467_vm3, %v1130_v20, 0.0  ;;  %v1180_v6 = vsel %vm2467_vm3, %v1132_v23, 0.0  ;;  %v1131_v53 = vmax.f32 %v1099_v25, 0.0  ;;  %v1133_v54 = vmax.f32 %v1101_v5, 0.0 }
 0x142   :  { %v1210_v15 = vrot.slane %v1178_v31, 4  ;;  %v1306_v55 = vrot.slane %v1180_v6, 4  ;;  %v1402_v27 = vmul.f32 %v1180_v6, %v1178_v31  ;;  %v1514_v24 = vsub.f32 %v1178_v31, %v1180_v6 }
 0x143   :  { %v1179_v7 = vsel %vm2467_vm3, %v1131_v53, 0.0  ;;  %v1181_v32 = vsel %vm2467_vm3, %v1133_v54, 0.0  ;;  %v2584_v1 = vadd.f32 %v3071_v19, %v935_v18  ;;  %v2587_v20 = vadd.f32 %v3072_v4, %v937_v34 }
 0x144   :  { %v1211_v49 = vmax.f32 %v1178_v31, %v1210_v15  ;;  %v1307_v36 = vmax.f32 %v1180_v6, %v1306_v55  ;;  %v1418_v11 = vrot.slane %v1402_v27, 4  ;;  %v1530_v23 = vsel %vm2467_vm3, %v1514_v24, -inf }
 0x145   :  { %v1546_v25 = vrot.slane %v1530_v23, 4  ;;  %v1216_v5 = vrot.slane %v1179_v7, 4  ;;  %v1312_v13 = vrot.slane %v1181_v32, 4  ;;  %v1403_v26 = vmul.f32 %v1181_v32, %v1179_v7 }
 0x146   :  { %v1212_v53 = vrot.slane %v1211_v49, 2  ;;  %v1308_v37 = vrot.slane %v1307_v36, 2  ;;  %v1419_v35 = vmax.f32 %v1402_v27, %v1418_v11  ;;  %v1515_v54 = vsub.f32 %v1179_v7, %v1181_v32 }
 0x147   :  { %v1547_v57 = vmax.f32 %v1530_v23, %v1546_v25  ;;  %v1217_v18 = vmax.f32 %v1179_v7, %v1216_v5  ;;  %v1313_v2 = vmax.f32 %v1181_v32, %v1312_v13  ;;  %v1424_v3 = vrot.slane %v1403_v26, 4 }
 0x148   :  { %v3085_v34 = vand.u32 7, %v2418_v39  ;;  %v1213_v6 = vmax.f32 %v1211_v49, %v1212_v53  ;;  %v1309_v15 = vmax.f32 %v1307_v36, %v1308_v37  ;;  %v1420_v55 = vrot.slane %v1419_v35, 2 }
 0x149   :  { %v1531_v24 = vsel %vm2467_vm3, %v1515_v54, -inf  ;;  %v1548_v12 = vrot.slane %v1547_v57, 2  ;;  %v1218_v9 = vrot.slane %v1217_v18, 2  ;;  %v1314_v27 = vrot.slane %v1313_v2, 2 }
 0x14a   :  { %vm2593_vm4 = vcmp.lt.s32.totalorder %v3085_v34, 6  ;;  %v1425_v11 = vmax.f32 %v1403_v26, %v1424_v3  ;;  %v1214_v23 = vrot.slane %v1213_v6, 1  ;;  %v1310_v7 = vrot.slane %v1309_v15, 1  ;;  %v3089_v26 = vld [vmem:[#allocation37_spill] sm:$0xff] }
 0x14b   :  { %v1421_v32 = vmax.f32 %v1419_v35, %v1420_v55  ;;  %v1552_v25 = vrot.slane %v1531_v24, 4  ;;  %v1549_v5 = vmax.f32 %v1547_v57, %v1548_v12  ;;  %v1219_v39 = vmax.f32 %v1217_v18, %v1218_v9 }
 0x14c   :  { %v1315_v13 = vmax.f32 %v1313_v2, %v1314_v27  ;;  %v1426_v34 = vrot.slane %v1425_v11, 2  ;;  %v1215_v50 = vmax.f32 %v1213_v6, %v1214_v23  ;;  %v1311_v16 = vmax.f32 %v1309_v15, %v1310_v7  ;;  %v825_v2 = vpop.f32.mrf.mxu0  ;;  %v3090_v27 = vld [vmem:[#allocation38_spill] sm:$0xff]  ;;  %v898_v23 = vpop.f32.mrf.mxu1 }
 0x14d   :  { %v1422_v49 = vrot.slane %v1421_v32, 1  ;;  %v1553_v37 = vmax.f32 %v1531_v24, %v1552_v25  ;;  %v1550_v36 = vrot.slane %v1549_v5, 1  ;;  %v1220_v53 = vrot.slane %v1219_v39, 1 }
 0x14e   :  { %v1316_v56 = vrot.slane %v1315_v13, 1  ;;  %v1427_v54 = vmax.f32 %v1425_v11, %v1426_v34  ;;  %v1654_v22 = vmul.f32 %v3088_v17, %v1215_v50  ;;  %v1683_v3 = vmul.f32 %v3089_v26, %v1311_v16 }
 0x14f   :  { %v1423_v21 = vmax.f32 %v1421_v32, %v1422_v49  ;;  %v1554_v14 = vrot.slane %v1553_v37, 2  ;;  %v1551_v35 = vmax.f32 %v1549_v5, %v1550_v36  ;;  %v1221_v55 = vmax.f32 %v1219_v39, %v1220_v53  ;;  %v829_v39 = vpop.f32.mrf.mxu0 }
 0x150   :  { %v1317_v12 = vmax.f32 %v1315_v13, %v1316_v56  ;;  %v1428_v9 = vrot.slane %v1427_v54, 1  ;;  %v1699_v57 = vadd.f32 %v1683_v3, %v1654_v22  ;;  %v1134_v6 = vmax.f32 %v2584_v1, 0.0 }
 0x151   :  { %v1555_v18 = vmax.f32 %v1553_v37, %v1554_v14  ;;  %v1728_v24 = vmul.f32 %v2447_v29, %v1551_v35  ;;  %v2605_v11 = vmul.f32 %v3090_v27, %v1423_v21  ;;  %v1655_v50 = vmul.f32 %v2449_v33, %v1221_v55  ;;  %v831_v31 = vpop.f32.mrf.mxu0 }
 0x152   :  { %v1684_v16 = vmul.f32 %v2451_v59, %v1317_v12  ;;  %v1182_v32 = vsel %vm2593_vm4, %v1134_v6, 0.0  ;;  %v1136_v14 = vmax.f32 %v2587_v20, 0.0  ;;  %v936_v22 = vadd.f32 %v825_v2, %v2476_v28 }
 0x153   :  { %3091 = vst [vmem:[#allocation21_spill] sm:$0xff] %v2605_v11  ;;  %v1556_v7 = vrot.slane %v1555_v18, 1  ;;  %v2613_v1 = vadd.f32 %v1728_v24, %v1699_v57  ;;  %v2615_v25 = vmax.f32 %v1427_v54, %v1428_v9  ;;  %v1222_v21 = vrot.slane %v1182_v32, 4  ;;  %v902_v57 = vpop.f32.mrf.mxu1 }
 0x154   :  { %v1700_v5 = vadd.f32 %v1684_v16, %v1655_v50  ;;  %v1184_v34 = vsel %vm2593_vm4, %v1136_v14, 0.0  ;;  %v1103_v49 = vadd.f32 %v3081_v30, %v936_v22  ;;  %v938_v37 = vadd.f32 %v898_v23, %v2480_v40 }
 0x155   :  { %3092 = vst [vmem:[#allocation32_spill] sm:$0xff] %v2613_v1  ;;  %v1557_v13 = vmax.f32 %v1555_v18, %v1556_v7  ;;  %v1223_v36 = vmax.f32 %v1182_v32, %v1222_v21  ;;  %v1318_v53 = vrot.slane %v1184_v34, 4  ;;  %v1404_v20 = vmul.f32 %v1184_v34, %v1182_v32 }
 0x156   :  { %v1516_v56 = vsub.f32 %v1182_v32, %v1184_v34  ;;  %v1135_v3 = vmax.f32 %v1103_v49, 0.0  ;;  %v1105_v54 = vadd.f32 %v3082_v38, %v938_v37  ;;  %v939_v35 = vadd.f32 %v829_v39, %v2484_v41 }
 0x157   :  { %v1729_v28 = vmul.f32 %v2455_v60, %v1557_v13  ;;  %v1224_v55 = vrot.slane %v1223_v36, 2  ;;  %v1319_v12 = vmax.f32 %v1184_v34, %v1318_v53  ;;  %v1430_v9 = vrot.slane %v1404_v20, 4 }
 0x158   :  { %v1532_v2 = vsel %vm2593_vm4, %v1516_v56, -inf  ;;  %v1183_v6 = vsel %vm2593_vm4, %v1135_v3, 0.0  ;;  %v1137_v24 = vmax.f32 %v1105_v54, 0.0  ;;  %v3094_v50 = vand.u32 7, %v2423_v63 }
 0x159   :  { %v2626_v18 = vadd.f32 %v1729_v28, %v1700_v5  ;;  %v1558_v40 = vrot.slane %v1532_v2, 4  ;;  %v1225_v41 = vmax.f32 %v1223_v36, %v1224_v55  ;;  %v1320_v23 = vrot.slane %v1319_v12, 2 }
 0x15a   :  { %vm2632_vm5 = vcmp.lt.s32.totalorder %v3094_v50, 6  ;;  %v1431_v7 = vmax.f32 %v1404_v20, %v1430_v9  ;;  %v1228_v32 = vrot.slane %v1183_v6, 4  ;;  %v1185_v22 = vsel %vm2593_vm4, %v1137_v24, 0.0 }
 0x15b   :  { %3093 = vst [vmem:[#allocation33_spill] sm:$0xff] %v2626_v18  ;;  %v1559_v14 = vmax.f32 %v1532_v2, %v1558_v40  ;;  %v1106_v5 = vadd.f32 %v3071_v19, %v939_v35  ;;  %v941_v21 = vadd.f32 %v902_v57, %v2488_v42  ;;  %v1226_v39 = vrot.slane %v1225_v41, 1 }
 0x15c   :  { %v1321_v13 = vmax.f32 %v1319_v12, %v1320_v23  ;;  %v1432_v34 = vrot.slane %v1431_v7, 2  ;;  %v1229_v63 = vmax.f32 %v1183_v6, %v1228_v32  ;;  %v1324_v37 = vrot.slane %v1185_v22, 4 }
 0x15d   :  { %v1560_v49 = vrot.slane %v1559_v14, 2  ;;  %v1405_v53 = vmul.f32 %v1185_v22, %v1183_v6  ;;  %v1517_v56 = vsub.f32 %v1183_v6, %v1185_v22  ;;  %v1227_v36 = vmax.f32 %v1225_v41, %v1226_v39 }
 0x15e   :  { %v1322_v28 = vrot.slane %v1321_v13, 1  ;;  %v1433_v20 = vmax.f32 %v1431_v7, %v1432_v34  ;;  %v1230_v3 = vrot.slane %v1229_v63, 2  ;;  %v1325_v55 = vmax.f32 %v1185_v22, %v1324_v37 }
 0x15f   :  { %v1561_v54 = vmax.f32 %v1559_v14, %v1560_v49  ;;  %v1436_v9 = vrot.slane %v1405_v53, 4  ;;  %v1533_v35 = vsel %vm2593_vm4, %v1517_v56, -inf  ;;  %v1656_v42 = vmul.f32 %v3088_v17, %v1227_v36 }
 0x160   :  { %v1323_v2 = vmax.f32 %v1321_v13, %v1322_v28  ;;  %v1434_v12 = vrot.slane %v1433_v20, 1  ;;  %v1231_v57 = vmax.f32 %v1229_v63, %v1230_v3  ;;  %v1326_v24 = vrot.slane %v1325_v55, 2 }
 0x161   :  { %v1562_v40 = vrot.slane %v1561_v54, 1  ;;  %v1437_v50 = vmax.f32 %v1405_v53, %v1436_v9  ;;  %v1564_v23 = vrot.slane %v1533_v35, 4  ;;  %v1138_v32 = vmax.f32 %v1106_v5, 0.0 }
 0x162   :  { %v1435_v6 = vmax.f32 %v1433_v20, %v1434_v12  ;;  %v1685_v41 = vmul.f32 %v3089_v26, %v1323_v2  ;;  %v1232_v7 = vrot.slane %v1231_v57, 1  ;;  %v1327_v22 = vmax.f32 %v1325_v55, %v1326_v24  ;;  %v904_v20 = vpop.f32.mrf.mxu1 }
 0x163   :  { %v1563_v14 = vmax.f32 %v1561_v54, %v1562_v40  ;;  %v1438_v39 = vrot.slane %v1437_v50, 2  ;;  %v1565_v34 = vmax.f32 %v1533_v35, %v1564_v23  ;;  %v1186_v63 = vsel %vm2632_vm5, %v1138_v32, 0.0 }
 0x164   :  { %v1701_v49 = vadd.f32 %v1685_v41, %v1656_v42  ;;  %v1775_v37 = vmul.f32 %v3090_v27, %v1435_v6  ;;  %v1233_v13 = vmax.f32 %v1231_v57, %v1232_v7  ;;  %v1328_v56 = vrot.slane %v1327_v22, 1 }
 0x165   :  { %v1730_v53 = vmul.f32 %v2447_v29, %v1563_v14  ;;  %v1439_v36 = vmax.f32 %v1437_v50, %v1438_v39  ;;  %v1566_v28 = vrot.slane %v1565_v34, 2  ;;  %v1234_v3 = vrot.slane %v1186_v63, 4  ;;  %v3098_v39 = vld [vmem:[#allocation39_spill] sm:$0xff] }
 0x166   :  { %v1657_v5 = vmul.f32 %v2449_v33, %v1233_v13  ;;  %v1108_v54 = vadd.f32 %v3072_v4, %v941_v21  ;;  %v940_v55 = vadd.f32 %v831_v31, %v2492_v43  ;;  %v1329_v35 = vmax.f32 %v1327_v22, %v1328_v56 }
 0x167   :  { %v1746_v9 = vadd.f32 %v1730_v53, %v1701_v49  ;;  %v1440_v42 = vrot.slane %v1439_v36, 1  ;;  %v1567_v2 = vmax.f32 %v1565_v34, %v1566_v28  ;;  %v1235_v12 = vmax.f32 %v1186_v63, %v1234_v3  ;;  %v833_v49 = vpop.f32.mrf.mxu0 }
 0x168   :  { %v1140_v57 = vmax.f32 %v1108_v54, 0.0  ;;  %v1107_v40 = vadd.f32 %v3081_v30, %v940_v55  ;;  %v942_v24 = vadd.f32 %v904_v20, %v2496_v44  ;;  %v1686_v41 = vmul.f32 %v2451_v59, %v1329_v35 }
 0x169   :  { %v2653_v50 = vadd.f32 %v1775_v37, %v1746_v9  ;;  %v1441_v23 = vmax.f32 %v1439_v36, %v1440_v42  ;;  %v1568_v6 = vrot.slane %v1567_v2, 1  ;;  %v1236_v7 = vrot.slane %v1235_v12, 2 }
 0x16a   :  { %v1188_v43 = vsel %vm2632_vm5, %v1140_v57, 0.0  ;;  %v1139_v21 = vmax.f32 %v1107_v40, 0.0  ;;  %v1109_v32 = vadd.f32 %v3082_v38, %v942_v24  ;;  %v1702_v22 = vadd.f32 %v1686_v41, %v1657_v5 }
 0x16b   :  { %3097 = vst [vmem:[#allocation22_spill] sm:$0xff] %v2653_v50  ;;  %v1569_v14 = vmax.f32 %v1567_v2, %v1568_v6  ;;  %v1776_v34 = vmul.f32 %v3098_v39, %v1441_v23  ;;  %v1330_v31 = vrot.slane %v1188_v43, 4  ;;  %v1237_v44 = vmax.f32 %v1235_v12, %v1236_v7 }
 0x16c   :  { %v1406_v37 = vmul.f32 %v1188_v43, %v1186_v63  ;;  %v1518_v13 = vsub.f32 %v1186_v63, %v1188_v43  ;;  %v1187_v53 = vsel %vm2632_vm5, %v1139_v21, 0.0  ;;  %v3099_v56 = vand.u32 7, %v2426_v62 }
 0x16d   :  { %v1731_v28 = vmul.f32 %v2455_v60, %v1569_v14  ;;  %v1331_v20 = vmax.f32 %v1188_v43, %v1330_v31  ;;  %v1240_v5 = vrot.slane %v1187_v53, 4  ;;  %v1141_v3 = vmax.f32 %v1109_v32, 0.0 }
 0x16e   :  { %vm2664_vm6 = vcmp.lt.s32.totalorder %v3099_v56, 6  ;;  %v1238_v54 = vrot.slane %v1237_v44, 1  ;;  %v1442_v55 = vrot.slane %v1406_v37, 4  ;;  %v1534_v9 = vsel %vm2632_vm5, %v1518_v13, -inf }
 0x16f   :  { %v943_v63 = vadd.f32 %v833_v49, %v2500_v0  ;;  %v1747_v35 = vadd.f32 %v1731_v28, %v1702_v22  ;;  %v1332_v42 = vrot.slane %v1331_v20, 2  ;;  %v1570_v2 = vrot.slane %v1534_v9, 4 }
 0x170   :  { %v1241_v62 = vmax.f32 %v1187_v53, %v1240_v5  ;;  %v1239_v12 = vmax.f32 %v1237_v44, %v1238_v54  ;;  %v1443_v57 = vmax.f32 %v1406_v37, %v1442_v55  ;;  %v1189_v40 = vsel %vm2632_vm5, %v1141_v3, 0.0  ;;  %v906_v3 = vpop.f32.mrf.mxu1 }
 0x171   :  { %v1110_v24 = vadd.f32 %v3071_v19, %v943_v63  ;;  %v2675_v23 = vadd.f32 %v1776_v34, %v1747_v35  ;;  %v1333_v6 = vmax.f32 %v1331_v20, %v1332_v42  ;;  %v1571_v41 = vmax.f32 %v1534_v9, %v1570_v2 }
 0x172   :  { %v1242_v7 = vrot.slane %v1241_v62, 2  ;;  %v1658_v43 = vmul.f32 %v3088_v17, %v1239_v12  ;;  %v1444_v21 = vrot.slane %v1443_v57, 2  ;;  %v1336_v0 = vrot.slane %v1189_v40, 4 }
 0x173   :  { %3102 = vst [vmem:[#allocation23_spill] sm:$0xff] %v2675_v23  ;;  %v1407_v32 = vmul.f32 %v1189_v40, %v1187_v53  ;;  %v1334_v14 = vrot.slane %v1333_v6, 1  ;;  %v1572_v22 = vrot.slane %v1571_v41, 2  ;;  %v1519_v49 = vsub.f32 %v1187_v53, %v1189_v40 }
 0x174   :  { %v1243_v31 = vmax.f32 %v1241_v62, %v1242_v7  ;;  %v1445_v44 = vmax.f32 %v1443_v57, %v1444_v21  ;;  %v1337_v37 = vmax.f32 %v1189_v40, %v1336_v0  ;;  %v1142_v56 = vmax.f32 %v1110_v24, 0.0  ;;  %v835_v40 = vpop.f32.mrf.mxu0  ;;  %v908_v21 = vpop.f32.mrf.mxu1 }
 0x175   :  { %v1448_v13 = vrot.slane %v1407_v32, 4  ;;  %v1335_v28 = vmax.f32 %v1333_v6, %v1334_v14  ;;  %v1573_v5 = vmax.f32 %v1571_v41, %v1572_v22  ;;  %v1535_v20 = vsel %vm2632_vm5, %v1519_v49, -inf }
 0x176   :  { %v1244_v34 = vrot.slane %v1243_v31, 1  ;;  %v1446_v54 = vrot.slane %v1445_v44, 1  ;;  %v1338_v55 = vrot.slane %v1337_v37, 2  ;;  %v1576_v63 = vrot.slane %v1535_v20, 4 }
 0x177   :  { %v1449_v9 = vmax.f32 %v1407_v32, %v1448_v13  ;;  %v1574_v35 = vrot.slane %v1573_v5, 1  ;;  %v1687_v42 = vmul.f32 %v3089_v26, %v1335_v28  ;;  %v1190_v53 = vsel %vm2664_vm6, %v1142_v56, 0.0 }
 0x178   :  { %v1245_v2 = vmax.f32 %v1243_v31, %v1244_v34  ;;  %v2685_v62 = vmul.f32 %v3098_v39, %v2615_v25  ;;  %v1339_v12 = vmax.f32 %v1337_v37, %v1338_v55  ;;  %v1577_v16 = vmax.f32 %v1535_v20, %v1576_v63 }
 0x179   :  { %v1450_v57 = vrot.slane %v1449_v9, 2  ;;  %v1447_v24 = vmax.f32 %v1445_v44, %v1446_v54  ;;  %v1575_v6 = vmax.f32 %v1573_v5, %v1574_v35  ;;  %v1703_v41 = vadd.f32 %v1687_v42, %v1658_v43  ;;  %v839_v43 = vpop.f32.mrf.mxu0 }
 0x17a   :  { %3103 = vst [vmem:[#allocation24_spill] sm:$0xff] %v2685_v62  ;;  %v1246_v7 = vrot.slane %v1190_v53, 4  ;;  %v1659_v0 = vmul.f32 %v2449_v33, %v1245_v2  ;;  %v1340_v32 = vrot.slane %v1339_v12, 1  ;;  %v1578_v22 = vrot.slane %v1577_v16, 2 }
 0x17b   :  { %v1451_v14 = vmax.f32 %v1449_v9, %v1450_v57  ;;  %v1732_v31 = vmul.f32 %v2447_v29, %v1575_v6  ;;  %v945_v25 = vadd.f32 %v906_v3, %v2504_v45  ;;  %v944_v37 = vadd.f32 %v835_v40, %v2508_v46 }
 0x17c   :  { %v1247_v49 = vmax.f32 %v1190_v53, %v1246_v7  ;;  %v1341_v13 = vmax.f32 %v1339_v12, %v1340_v32  ;;  %v1579_v28 = vmax.f32 %v1577_v16, %v1578_v22  ;;  %v946_v44 = vadd.f32 %v908_v21, %v2512_v47 }
 0x17d   :  { %v1452_v56 = vrot.slane %v1451_v14, 1  ;;  %v3104_v5 = vand.u32 7, %v2429_v61  ;;  %v2698_v20 = vadd.f32 %v1732_v31, %v1703_v41  ;;  %v1112_v55 = vadd.f32 %v3072_v4, %v945_v25 }
 0x17e   :  { %v1248_v54 = vrot.slane %v1247_v49, 2  ;;  %v1111_v45 = vadd.f32 %v3081_v30, %v944_v37  ;;  %v2703_v46 = vmul.f32 %v3090_v27, %v1447_v24  ;;  %v1580_v3 = vrot.slane %v1579_v28, 1 }
 0x17f   :  { %vm2694_vm7 = vcmp.lt.s32.totalorder %v3104_v5, 6  ;;  %3107 = vst [vmem:[#allocation25_spill] sm:$0xff] %v2698_v20  ;;  %v1688_v47 = vmul.f32 %v2451_v59, %v1341_v13  ;;  %v1113_v9 = vadd.f32 %v3082_v38, %v946_v44  ;;  %v1144_v63 = vmax.f32 %v1112_v55, 0.0 }
 0x180   :  { %3108 = vst [vmem:[#allocation34_spill] sm:$0xff] %v2703_v46  ;;  %v1249_v61 = vmax.f32 %v1247_v49, %v1248_v54  ;;  %v1143_v35 = vmax.f32 %v1111_v45, 0.0  ;;  %v947_v42 = vadd.f32 %v839_v43, %v2516_v48  ;;  %v1453_v2 = vmax.f32 %v1451_v14, %v1452_v56 }
 0x181   :  { %v1581_v12 = vmax.f32 %v1579_v28, %v1580_v3  ;;  %v1704_v57 = vadd.f32 %v1688_v47, %v1659_v0  ;;  %v1145_v16 = vmax.f32 %v1113_v9, 0.0  ;;  %v1192_v6 = vsel %vm2664_vm6, %v1144_v63, 0.0 }
 0x182   :  { %v1250_v40 = vrot.slane %v1249_v61, 1  ;;  %v1191_v24 = vsel %vm2664_vm6, %v1143_v35, 0.0  ;;  %v1114_v41 = vadd.f32 %v3071_v19, %v947_v42  ;;  %v1342_v21 = vrot.slane %v1192_v6, 4 }
 0x183   :  { %v1733_v7 = vmul.f32 %v2455_v60, %v1581_v12  ;;  %v1408_v32 = vmul.f32 %v1192_v6, %v1190_v53  ;;  %v1520_v22 = vsub.f32 %v1190_v53, %v1192_v6  ;;  %v1252_v48 = vrot.slane %v1191_v24, 4 }
 0x184   :  { %v1251_v31 = vmax.f32 %v1249_v61, %v1250_v40  ;;  %v1193_v0 = vsel %vm2664_vm6, %v1145_v16, 0.0  ;;  %v1146_v14 = vmax.f32 %v1114_v41, 0.0  ;;  %v1343_v25 = vmax.f32 %v1192_v6, %v1342_v21  ;;  %v912_v6 = vpop.f32.mrf.mxu1 }
 0x185   :  { %v2716_v49 = vadd.f32 %v1733_v7, %v1704_v57  ;;  %v1454_v37 = vrot.slane %v1408_v32, 4  ;;  %v1536_v13 = vsel %vm2664_vm6, %v1520_v22, -inf  ;;  %v1253_v44 = vmax.f32 %v1191_v24, %v1252_v48 }
 0x186   :  { %v1660_v56 = vmul.f32 %v3088_v17, %v1251_v31  ;;  %v1582_v28 = vrot.slane %v1536_v13, 4  ;;  %v1348_v43 = vrot.slane %v1193_v0, 4  ;;  %v1344_v5 = vrot.slane %v1343_v25, 2 }
 0x187   :  { %3109 = vst [vmem:[#allocation35_spill] sm:$0xff] %v2716_v49  ;;  %v1455_v53 = vmax.f32 %v1408_v32, %v1454_v37  ;;  %v1409_v54 = vmul.f32 %v1193_v0, %v1191_v24  ;;  %v1521_v55 = vsub.f32 %v1191_v24, %v1193_v0  ;;  %v1254_v3 = vrot.slane %v1253_v44, 2 }
 0x188   :  { %v1583_v45 = vmax.f32 %v1536_v13, %v1582_v28  ;;  %v1349_v47 = vmax.f32 %v1193_v0, %v1348_v43  ;;  %v2723_v9 = vsel %vm2694_vm7, %v1146_v14, 0.0  ;;  %v1345_v61 = vmax.f32 %v1343_v25, %v1344_v5  ;;  %v841_v0 = vpop.f32.mrf.mxu0  ;;  %v914_v5 = vpop.f32.mrf.mxu1 }
 0x189   :  { %v1456_v63 = vrot.slane %v1455_v53, 2  ;;  %v1460_v35 = vrot.slane %v1409_v54, 4  ;;  %v1537_v42 = vsel %vm2664_vm6, %v1521_v55, -inf  ;;  %v1255_v57 = vmax.f32 %v1253_v44, %v1254_v3 }
 0x18a   :  { %v1584_v12 = vrot.slane %v1583_v45, 2  ;;  %v1350_v16 = vrot.slane %v1349_v47, 2  ;;  %v1588_v40 = vrot.slane %v1537_v42, 4  ;;  %v1346_v41 = vrot.slane %v1345_v61, 1 }
 0x18b   :  { %v1457_v24 = vmax.f32 %v1455_v53, %v1456_v63  ;;  %v1461_v7 = vmax.f32 %v1409_v54, %v1460_v35  ;;  %v1258_v21 = vrot.slane %v2723_v9, 4  ;;  %v1256_v22 = vrot.slane %v1255_v57, 1  ;;  %v843_v35 = vpop.f32.mrf.mxu0 }
 0x18c   :  { %v1585_v32 = vmax.f32 %v1583_v45, %v1584_v12  ;;  %v1351_v31 = vmax.f32 %v1349_v47, %v1350_v16  ;;  %v1589_v48 = vmax.f32 %v1537_v42, %v1588_v40  ;;  %v1347_v14 = vmax.f32 %v1345_v61, %v1346_v41 }
 0x18d   :  { %v1458_v25 = vrot.slane %v1457_v24, 1  ;;  %v1462_v37 = vrot.slane %v1461_v7, 2  ;;  %v1259_v36 = vmax.f32 %v2723_v9, %v1258_v21  ;;  %v1257_v28 = vmax.f32 %v1255_v57, %v1256_v22  ;;  %v916_v22 = vpop.f32.mrf.mxu1 }
 0x18e   :  { %v1586_v13 = vrot.slane %v1585_v32, 1  ;;  %v1352_v44 = vrot.slane %v1351_v31, 1  ;;  %v1590_v43 = vrot.slane %v1589_v48, 2  ;;  %v2730_v53 = vmul.f32 %v3098_v39, %v1453_v2 }
 0x18f   :  { %v1689_v54 = vmul.f32 %v3089_v26, %v1347_v14  ;;  %v1463_v55 = vmax.f32 %v1461_v7, %v1462_v37  ;;  %v1260_v45 = vrot.slane %v1259_v36, 2  ;;  %v1661_v47 = vmul.f32 %v2449_v33, %v1257_v28  ;;  %v3114_v14 = vld [vmem:[#allocation28_spill] sm:$0xff]  ;;  %v845_v37 = vpop.f32.mrf.mxu0 }
 0x190   :  { %3110 = vst [vmem:[#allocation26_spill] sm:$0xff] %v2730_v53  ;;  %v1587_v3 = vmax.f32 %v1585_v32, %v1586_v13  ;;  %v1353_v61 = vmax.f32 %v1351_v31, %v1352_v44  ;;  %v1591_v63 = vmax.f32 %v1589_v48, %v1590_v43  ;;  %v949_v16 = vadd.f32 %v912_v6, %v2520_v8  ;;  %v3115_v13 = vld [vmem:[#allocation13_spill] sm:$0xff]  ;;  %v918_v53 = vpop.f32.mrf.mxu1 }
 0x191   :  { %v2734_v42 = vadd.f32 %v1689_v54, %v1660_v56  ;;  %v1464_v12 = vrot.slane %v1463_v55, 1  ;;  %v1261_v57 = vmax.f32 %v1259_v36, %v1260_v45  ;;  %v3111_v40 = vand.u32 7, %v2438_v58 }
 0x192   :  { %v2743_v41 = vmax.f32 %v1457_v24, %v1458_v25  ;;  %v1592_v7 = vrot.slane %v1591_v63, 1  ;;  %v1690_v21 = vmul.f32 %v2451_v59, %v1353_v61  ;;  %v948_v32 = vadd.f32 %v841_v0, %v2524_v10 }
 0x193   :  { %vm2739_vm8 = vcmp.lt.s32.totalorder %v3111_v40, 6  ;;  %v2748_v56 = vmul.f32 %v2447_v29, %v1587_v3  ;;  %v1262_v31 = vrot.slane %v1261_v57, 1  ;;  %v1116_v8 = vadd.f32 %v3072_v4, %v949_v16 }
 0x194   :  { %v950_v58 = vadd.f32 %v914_v5, %v2528_v51  ;;  %v1593_v6 = vmax.f32 %v1591_v63, %v1592_v7  ;;  %v2752_v48 = vadd.f32 %v1690_v21, %v1661_v47  ;;  %v1115_v24 = vadd.f32 %v3081_v30, %v948_v32 }
 0x195   :  { %v951_v25 = vadd.f32 %v843_v35, %v3114_v14  ;;  %v2756_v36 = vmax.f32 %v1463_v55, %v1464_v12  ;;  %v1148_v10 = vmax.f32 %v1116_v8, 0.0  ;;  %v953_v28 = vadd.f32 %v916_v22, %v3115_v13  ;;  %v3116_v55 = vld [vmem:[#allocation29_spill] sm:$0xff] }
 0x196   :  { %v1117_v0 = vadd.f32 %v3082_v38, %v950_v58  ;;  %v2761_v44 = vmul.f32 %v2455_v60, %v1593_v6  ;;  %v1263_v43 = vmax.f32 %v1261_v57, %v1262_v31  ;;  %v1147_v51 = vmax.f32 %v1115_v24, 0.0 }
 0x197   :  { %v1118_v5 = vadd.f32 %v3071_v19, %v951_v25  ;;  %v1196_v54 = vsel %vm2694_vm7, %v1148_v10, 0.0  ;;  %v2767_v3 = vadd.f32 %v3072_v4, %v953_v28  ;;  %v952_v47 = vadd.f32 %v845_v37, %v3116_v55 }
 0x198   :  { %v1149_v45 = vmax.f32 %v1117_v0, 0.0  ;;  %v1354_v61 = vrot.slane %v1196_v54, 4  ;;  %v1410_v63 = vmul.f32 %v1196_v54, %v2723_v9  ;;  %v1522_v35 = vsub.f32 %v2723_v9, %v1196_v54 }
 0x199   :  { %v1195_v12 = vsel %vm2694_vm7, %v1147_v51, 0.0  ;;  %v1150_v40 = vmax.f32 %v1118_v5, 0.0  ;;  %v1152_v7 = vmax.f32 %v2767_v3, 0.0  ;;  %vm1874_vm3 = vcmask 64512  }
 0x19a   :  { %v1264_v57 = vrot.slane %v1195_v12, 4  ;;  %v1197_v16 = vsel %vm2694_vm7, %v1149_v45, 0.0  ;;  %v1355_v21 = vmax.f32 %v1196_v54, %v1354_v61  ;;  %v1466_v32 = vrot.slane %v1410_v63, 4 }
 0x19b   :  { %v1538_v22 = vsel %vm2694_vm7, %v1522_v35, -inf  ;;  %v1360_v31 = vrot.slane %v1197_v16, 4  ;;  %v1411_v6 = vmul.f32 %v1197_v16, %v1195_v12  ;;  %v1523_v9 = vsub.f32 %v1195_v12, %v1197_v16 }
 0x19c   :  { %v1594_v8 = vrot.slane %v1538_v22, 4  ;;  %v1265_v58 = vmax.f32 %v1195_v12, %v1264_v57  ;;  %v1356_v24 = vrot.slane %v1355_v21, 2  ;;  %v1467_v14 = vmax.f32 %v1410_v63, %v1466_v32 }
 0x19d   :  { %v1361_v25 = vmax.f32 %v1197_v16, %v1360_v31  ;;  %v1198_v37 = vsel %vm2739_vm8, %v1150_v40, 0.0  ;;  %v1472_v13 = vrot.slane %v1411_v6, 4  ;;  %v1539_v28 = vsel %vm2694_vm7, %v1523_v9, -inf }
 0x19e   :  { %v1595_v10 = vmax.f32 %v1538_v22, %v1594_v8  ;;  %v1266_v0 = vrot.slane %v1265_v58, 2  ;;  %v1357_v51 = vmax.f32 %v1355_v21, %v1356_v24  ;;  %v1468_v5 = vrot.slane %v1467_v14, 2 }
 0x19f   :  { %v1362_v54 = vrot.slane %v1361_v25, 2  ;;  %v1600_v45 = vrot.slane %v1539_v28, 4  ;;  %v1473_v61 = vmax.f32 %v1411_v6, %v1472_v13  ;;  %v1270_v35 = vrot.slane %v1198_v37, 4 }
 0x1a0   :  { %v1596_v3 = vrot.slane %v1595_v10, 2  ;;  %v1267_v55 = vmax.f32 %v1265_v58, %v1266_v0  ;;  %v1358_v12 = vrot.slane %v1357_v51, 1  ;;  %v1469_v63 = vmax.f32 %v1467_v14, %v1468_v5 }
 0x1a1   :  { %v1363_v57 = vmax.f32 %v1361_v25, %v1362_v54  ;;  %v1601_v16 = vmax.f32 %v1539_v28, %v1600_v45  ;;  %v1474_v22 = vrot.slane %v1473_v61, 2  ;;  %v1271_v31 = vmax.f32 %v1198_v37, %v1270_v35 }
 0x1a2   :  { %v1597_v32 = vmax.f32 %v1595_v10, %v1596_v3  ;;  %v1268_v40 = vrot.slane %v1267_v55, 1  ;;  %v1359_v8 = vmax.f32 %v1357_v51, %v1358_v12  ;;  %v1470_v15 = vrot.slane %v1469_v63, 1  ;;  %v3118_v51 = vld [vmem:[#allocation40_spill] sm:$0xff] }
 0x1a3   :  { %v1364_v34 = vrot.slane %v1363_v57, 1  ;;  %v1602_v9 = vrot.slane %v1601_v16, 2  ;;  %v1475_v23 = vmax.f32 %v1473_v61, %v1474_v22  ;;  %v1272_v50 = vrot.slane %v1271_v31, 2 }
 0x1a4   :  { %v1598_v21 = vrot.slane %v1597_v32, 1  ;;  %v1269_v24 = vmax.f32 %v1267_v55, %v1268_v40  ;;  %v2784_v58 = vmul.f32 %v3088_v17, %v1263_v43  ;;  %v2786_v6 = vmax.f32 %v1469_v63, %v1470_v15  ;;  %v849_v55 = vpop.f32.mrf.mxu0  ;;  %v922_v63 = vpop.f32.mrf.mxu1  ;;  %v3123_v40 = vld [vmem:[#allocation14_spill] sm:$0xff] }
 0x1a5   :  { %v1365_v14 = vmax.f32 %v1363_v57, %v1364_v34  ;;  %v1603_v25 = vmax.f32 %v1601_v16, %v1602_v9  ;;  %v2791_v0 = vmul.f32 %v3089_v26, %v1359_v8  ;;  %v1476_v13 = vrot.slane %v1475_v23, 1 }
 0x1a6   :  { %3117 = vst [vmem:[#allocation36_spill] sm:$0xff] %v2786_v6  ;;  %v2788_v10 = vmax.f32 %v1597_v32, %v1598_v21  ;;  %v1273_v28 = vmax.f32 %v1271_v31, %v1272_v50  ;;  %v3119_v5 = vand.u32 7, %v3118_v51  ;;  %v2800_v43 = vmul.f32 %v2449_v33, %v1269_v24 }
 0x1a7   :  { %v1604_v15 = vrot.slane %v1603_v25, 1  ;;  %v1200_v45 = vsel %vm2739_vm8, %v1152_v7, 0.0  ;;  %v1119_v3 = vadd.f32 %v3081_v30, %v952_v47  ;;  %v2806_v61 = vmul.f32 %v2451_v59, %v1365_v14  ;;  %v3124_v7 = vld [vmem:[#allocation30_spill] sm:$0xff]  ;;  %v3125_v14 = vld [vmem:[#allocation15_spill] sm:$0xff] }
 0x1a8   :  { %vm2795_vm9 = vcmp.lt.s32.totalorder %v3119_v5, 6  ;;  %v1274_v50 = vrot.slane %v1273_v28, 1  ;;  %v1366_v35 = vrot.slane %v1200_v45, 4  ;;  %v1412_v12 = vmul.f32 %v1200_v45, %v1198_v37 }
 0x1a9   :  { %v2808_v57 = vmax.f32 %v1475_v23, %v1476_v13  ;;  %v1524_v16 = vsub.f32 %v1198_v37, %v1200_v45  ;;  %v1151_v32 = vmax.f32 %v1119_v3, 0.0  ;;  %v954_v22 = vadd.f32 %v918_v53, %v3123_v40 }
 0x1aa   :  { %v1275_v31 = vmax.f32 %v1273_v28, %v1274_v50  ;;  %v1367_v8 = vmax.f32 %v1200_v45, %v1366_v35  ;;  %v1478_v34 = vrot.slane %v1412_v12, 4  ;;  %v955_v9 = vadd.f32 %v849_v55, %v3124_v7 }
 0x1ab   :  { %3122 = vst [vmem:[#allocation37_spill] sm:$0xff] %v2808_v57  ;;  %v1540_v47 = vsel %vm2739_vm8, %v1524_v16, -inf  ;;  %v1199_v21 = vsel %vm2739_vm8, %v1151_v32, 0.0  ;;  %v1121_v24 = vadd.f32 %v3082_v38, %v954_v22  ;;  %v957_v23 = vadd.f32 %v922_v63, %v3125_v14 }
 0x1ac   :  { %v2818_v13 = vmax.f32 %v1603_v25, %v1604_v15  ;;  %v1368_v37 = vrot.slane %v1367_v8, 2  ;;  %v1479_v51 = vmax.f32 %v1412_v12, %v1478_v34  ;;  %v1606_v53 = vrot.slane %v1540_v47, 4  ;;  %v851_v12 = vpop.f32.mrf.mxu0 }
 0x1ad   :  { %v1276_v28 = vrot.slane %v1199_v21, 4  ;;  %v1153_v5 = vmax.f32 %v1121_v24, 0.0  ;;  %v1122_v45 = vadd.f32 %v3071_v19, %v955_v9  ;;  %v1124_v3 = vadd.f32 %v3072_v4, %v957_v23 }
 0x1ae   :  { %v2823_v55 = vmul.f32 %v3088_v17, %v1275_v31  ;;  %v1369_v50 = vmax.f32 %v1367_v8, %v1368_v37  ;;  %v1480_v35 = vrot.slane %v1479_v51, 2  ;;  %v1607_v16 = vmax.f32 %v1540_v47, %v1606_v53  ;;  %v3126_v37 = vld [vmem:[#allocation16_spill] sm:$0xff] }
 0x1af   :  { %v1277_v32 = vmax.f32 %v1199_v21, %v1276_v28  ;;  %v1201_v25 = vsel %vm2739_vm8, %v1153_v5, 0.0  ;;  %v1154_v15 = vmax.f32 %v1122_v45, 0.0  ;;  %v1156_v63 = vmax.f32 %v1124_v3, 0.0 }
 0x1b0   :  { %v1370_v40 = vrot.slane %v1369_v50, 1  ;;  %v2827_v22 = vmax.f32 %v1479_v51, %v1480_v35  ;;  %v1608_v34 = vrot.slane %v1607_v16, 2  ;;  %v1372_v7 = vrot.slane %v1201_v25, 4 }
 0x1b1   :  { %v1278_v9 = vrot.slane %v1277_v32, 2  ;;  %v1413_v24 = vmul.f32 %v1201_v25, %v1199_v21  ;;  %v1525_v14 = vsub.f32 %v1199_v21, %v1201_v25  ;;  %v1202_v31 = vsel %vm2795_vm9, %v1154_v15, 0.0 }
 0x1b2   :  { %v1371_v8 = vmax.f32 %v1369_v50, %v1370_v40  ;;  %v1609_v47 = vmax.f32 %v1607_v16, %v1608_v34  ;;  %v1373_v23 = vmax.f32 %v1201_v25, %v1372_v7  ;;  %v956_v53 = vadd.f32 %v851_v12, %v3126_v37  ;;  %v924_v7 = vpop.f32.mrf.mxu1 }
 0x1b3   :  { %v1279_v28 = vmax.f32 %v1277_v32, %v1278_v9  ;;  %v1484_v5 = vrot.slane %v1413_v24, 4  ;;  %v1541_v45 = vsel %vm2739_vm8, %v1525_v14, -inf  ;;  %v1282_v51 = vrot.slane %v1202_v31, 4 }
 0x1b4   :  { %v1610_v35 = vrot.slane %v1609_v47, 1  ;;  %v1374_v49 = vrot.slane %v1373_v23, 2  ;;  %v1612_v46 = vrot.slane %v1541_v45, 4  ;;  %v1204_v50 = vsel %vm2795_vm9, %v1156_v63, 0.0 }
 0x1b5   :  { %v1280_v21 = vrot.slane %v1279_v28, 1  ;;  %v1485_v20 = vmax.f32 %v1413_v24, %v1484_v5  ;;  %v1283_v62 = vmax.f32 %v1202_v31, %v1282_v51  ;;  %v2838_v16 = vmul.f32 %v3089_v26, %v1371_v8 }
 0x1b6   :  { %v1375_v32 = vmax.f32 %v1373_v23, %v1374_v49  ;;  %v1613_v25 = vmax.f32 %v1541_v45, %v1612_v46  ;;  %v1378_v15 = vrot.slane %v1204_v50, 4  ;;  %v1414_v34 = vmul.f32 %v1204_v50, %v1202_v31  ;;  %v853_v23 = vpop.f32.mrf.mxu0 }
 0x1b7   :  { %v1281_v2 = vmax.f32 %v1279_v28, %v1280_v21  ;;  %v1486_v12 = vrot.slane %v1485_v20, 2  ;;  %v1284_v40 = vrot.slane %v1283_v62, 2  ;;  %v1526_v3 = vsub.f32 %v1202_v31, %v1204_v50  ;;  %v926_v31 = vpop.f32.mrf.mxu1 }
 0x1b8   :  { %v1376_v9 = vrot.slane %v1375_v32, 1  ;;  %v1614_v14 = vrot.slane %v1613_v25, 2  ;;  %v1379_v37 = vmax.f32 %v1204_v50, %v1378_v15  ;;  %v2840_v24 = vmax.f32 %v1609_v47, %v1610_v35 }
 0x1b9   :  { %v2842_v5 = vmax.f32 %v1485_v20, %v1486_v12  ;;  %v1285_v63 = vmax.f32 %v1283_v62, %v1284_v40  ;;  %v1490_v51 = vrot.slane %v1414_v34, 4  ;;  %v1542_v46 = vsel %vm2795_vm9, %v1526_v3, -inf  ;;  %v3127_v3 = vld [vmem:[#allocation31_spill] sm:$0xff] }
 0x1ba   :  { %v1377_v8 = vmax.f32 %v1375_v32, %v1376_v9  ;;  %v1615_v18 = vmax.f32 %v1613_v25, %v1614_v14  ;;  %v1380_v49 = vrot.slane %v1379_v37, 2  ;;  %v2847_v28 = vmul.f32 %v2449_v33, %v1281_v2 }
 0x1bb   :  { %v1286_v45 = vrot.slane %v1285_v63, 1  ;;  %v1491_v21 = vmax.f32 %v1414_v34, %v1490_v51  ;;  %v1618_v15 = vrot.slane %v1542_v46, 4  ;;  %v1123_v62 = vadd.f32 %v3081_v30, %v956_v53  ;;  %v3128_v34 = vld [vmem:[#allocation17_spill] sm:$0xff]  ;;  %v855_v51 = vpop.f32.mrf.mxu0 }
 0x1bc   :  { %v1616_v20 = vrot.slane %v1615_v18, 1  ;;  %v1381_v35 = vmax.f32 %v1379_v37, %v1380_v49  ;;  %v2852_v50 = vmul.f32 %v2451_v59, %v1377_v8  ;;  %v958_v12 = vadd.f32 %v924_v7, %v3127_v3  ;;  %v928_v8 = vpop.f32.mrf.mxu1 }
 0x1bd   :  { %v1492_v32 = vrot.slane %v1491_v21, 2  ;;  %v1619_v25 = vmax.f32 %v1542_v46, %v1618_v15  ;;  %v2855_v40 = vmax.f32 %v1285_v63, %v1286_v45  ;;  %v1155_v9 = vmax.f32 %v1123_v62, 0.0 }
 0x1be   :  { %v1382_v2 = vrot.slane %v1381_v35, 1  ;;  %v959_v14 = vadd.f32 %v853_v23, %v3128_v34  ;;  %v2858_v11 = vmax.f32 %v1615_v18, %v1616_v20  ;;  %v1125_v53 = vadd.f32 %v3082_v38, %v958_v12  ;;  %v3132_v23 = vld [vmem:[#allocation18_spill] sm:$0xff]  ;;  %v3133_v20 = vld [vmem:[#allocation19_spill] sm:$0xff] }
 0x1bf   :  { %v2860_v47 = vmax.f32 %v1491_v21, %v1492_v32  ;;  %v1620_v37 = vrot.slane %v1619_v25, 2  ;;  %v1203_v49 = vsel %vm2795_vm9, %v1155_v9, 0.0  ;;  %v3129_v7 = vand.u32 7, %v2573_v52  ;;  %v3134_v52 = vld [vmem:[#allocation20_spill] sm:$0xff] }
 0x1c0   :  { %v1126_v46 = vadd.f32 %v3071_v19, %v959_v14  ;;  %v961_v18 = vadd.f32 %v926_v31, %v3132_v23  ;;  %v1288_v21 = vrot.slane %v1203_v49, 4  ;;  %v1157_v15 = vmax.f32 %v1125_v53, 0.0 }
 0x1c1   :  { %vm2867_vm10 = vcmp.lt.s32.totalorder %v3129_v7, 6  ;;  %v2873_v45 = vmax.f32 %v1619_v25, %v1620_v37  ;;  %v960_v62 = vadd.f32 %v855_v51, %v3133_v20  ;;  %v2876_v32 = vmax.f32 %v1381_v35, %v1382_v2 }
 0x1c2   :  { %v1158_v3 = vmax.f32 %v1126_v46, 0.0  ;;  %v1128_v12 = vadd.f32 %v3072_v4, %v961_v18  ;;  %v962_v9 = vadd.f32 %v928_v8, %v3134_v52  ;;  %v1289_v34 = vmax.f32 %v1203_v49, %v1288_v21 }
 0x1c3   :  { %v1205_v7 = vsel %vm2795_vm9, %v1157_v15, 0.0  ;;  %v1127_v19 = vadd.f32 %v3081_v30, %v960_v62  ;;  %v3135_v31 = vrot.slane %v2827_v22, 1  ;;  %vm1882_vm4 = vcmask 57344  }
 0x1c4   :  { %v1384_v14 = vrot.slane %v1205_v7, 4  ;;  %v1415_v51 = vmul.f32 %v1205_v7, %v1203_v49  ;;  %v1527_v35 = vsub.f32 %v1203_v49, %v1205_v7  ;;  %v1206_v2 = vsel %vm2867_vm10, %v1158_v3, 0.0 }
 0x1c5   :  { %v2886_v25 = vmax.f32 %v2827_v22, %v3135_v31  ;;  %v1290_v37 = vrot.slane %v1289_v34, 2  ;;  %v1294_v53 = vrot.slane %v1206_v2, 4  ;;  %v1160_v8 = vmax.f32 %v1128_v12, 0.0 }
 0x1c6   :  { %v1385_v46 = vmax.f32 %v1205_v7, %v1384_v14  ;;  %v1496_v23 = vrot.slane %v1415_v51, 4  ;;  %v1543_v30 = vsel %vm2795_vm9, %v1527_v35, -inf  ;;  %v1159_v18 = vmax.f32 %v1127_v19, 0.0 }
 0x1c7   :  { %3136 = vst [vmem:[#allocation38_spill] sm:$0xff] %v2886_v25  ;;  %v1291_v21 = vmax.f32 %v1289_v34, %v1290_v37  ;;  %v1624_v22 = vrot.slane %v1543_v30, 4  ;;  %v1295_v15 = vmax.f32 %v1206_v2, %v1294_v53  ;;  %v1208_v49 = vsel %vm2867_vm10, %v1160_v8, 0.0 }
 0x1c8   :  { %v1386_v20 = vrot.slane %v1385_v46, 2  ;;  %v1497_v62 = vmax.f32 %v1415_v51, %v1496_v23  ;;  %v1390_v3 = vrot.slane %v1208_v49, 4  ;;  %v1416_v52 = vmul.f32 %v1208_v49, %v1206_v2 }
 0x1c9   :  { %v1292_v31 = vrot.slane %v1291_v21, 1  ;;  %v1625_v4 = vmax.f32 %v1543_v30, %v1624_v22  ;;  %v1296_v1 = vrot.slane %v1295_v15, 2  ;;  %v1528_v12 = vsub.f32 %v1206_v2, %v1208_v49 }
 0x1ca   :  { %v1387_v7 = vmax.f32 %v1385_v46, %v1386_v20  ;;  %v1498_v14 = vrot.slane %v1497_v62, 2  ;;  %v1391_v25 = vmax.f32 %v1208_v49, %v1390_v3  ;;  %v1502_v54 = vrot.slane %v1416_v52, 4 }
 0x1cb   :  { %v1626_v35 = vrot.slane %v1625_v4, 2  ;;  %v1297_v19 = vmax.f32 %v1295_v15, %v1296_v1  ;;  %v1544_v34 = vsel %vm2867_vm10, %v1528_v12, -inf  ;;  %v1129_v37 = vadd.f32 %v3082_v38, %v962_v9 }
 0x1cc   :  { %v1388_v53 = vrot.slane %v1387_v7, 1  ;;  %v1499_v8 = vmax.f32 %v1497_v62, %v1498_v14  ;;  %v1392_v51 = vrot.slane %v1391_v25, 2  ;;  %v1503_v23 = vmax.f32 %v1416_v52, %v1502_v54 }
 0x1cd   :  { %v1627_v57 = vmax.f32 %v1625_v4, %v1626_v35  ;;  %v1298_v6 = vrot.slane %v1297_v19, 1  ;;  %v1630_v30 = vrot.slane %v1544_v34, 4  ;;  %v1207_v2 = vsel %vm2867_vm10, %v1159_v18, 0.0 }
 0x1ce   :  { %v1293_v46 = vmax.f32 %v1291_v21, %v1292_v31  ;;  %v1393_v22 = vmax.f32 %v1391_v25, %v1392_v51  ;;  %v1504_v49 = vrot.slane %v1503_v23, 2  ;;  %v1300_v20 = vrot.slane %v1207_v2, 4 }
 0x1cf   :  { %v1389_v1 = vmax.f32 %v1387_v7, %v1388_v53  ;;  %v1628_v15 = vrot.slane %v1627_v57, 1  ;;  %v1631_v3 = vmax.f32 %v1544_v34, %v1630_v30  ;;  %v1161_v12 = vmax.f32 %v1129_v37, 0.0 }
 0x1d0   :  { %v1299_v39 = vmax.f32 %v1297_v19, %v1298_v6  ;;  %v1394_v38 = vrot.slane %v1393_v22, 1  ;;  %v1301_v9 = vmax.f32 %v1207_v2, %v1300_v20  ;;  %v1494_v62 = vrot.slane %v2860_v47, 1 }
 0x1d1   :  { %v1632_v52 = vrot.slane %v1631_v3, 2  ;;  %v1209_v4 = vsel %vm2867_vm10, %v1161_v12, 0.0  ;;  %v1500_v14 = vrot.slane %v1499_v8, 1  ;;  %v1505_v54 = vmax.f32 %v1503_v23, %v1504_v49 }
 0x1d2   :  { %v1302_v18 = vrot.slane %v1301_v9, 2  ;;  %v1396_v21 = vrot.slane %v1209_v4, 4  ;;  %v1417_v25 = vmul.f32 %v1209_v4, %v1207_v2  ;;  %v3137_v31 = vrot.slane %v2842_v5, 1 }
 0x1d3   :  { %v1395_v35 = vmax.f32 %v1393_v22, %v1394_v38  ;;  %v1529_v6 = vsub.f32 %v1207_v2, %v1209_v4  ;;  %v2909_v19 = vmax.f32 %v2860_v47, %v1494_v62  ;;  %v1506_v34 = vrot.slane %v1505_v54, 1 }
 0x1d4   :  { %v2906_v7 = vmax.f32 %v2842_v5, %v3137_v31  ;;  %v1303_v37 = vmax.f32 %v1301_v9, %v1302_v18  ;;  %v1397_v53 = vmax.f32 %v1209_v4, %v1396_v21  ;;  %v1508_v51 = vrot.slane %v1417_v25, 4 }
 0x1d5   :  { %v2911_v30 = vmax.f32 %v1499_v8, %v1500_v14  ;;  %v1545_v23 = vsel %vm2867_vm10, %v1529_v6, -inf  ;;  %v2915_v49 = vmax.f32 %v1505_v54, %v1506_v34  ;;  %v3138_v20 = vrot.slane %v2873_v45, 1 }
 0x1d6   :  { %v1633_v22 = vmax.f32 %v1631_v3, %v1632_v52  ;;  %v1304_v2 = vrot.slane %v1303_v37, 1  ;;  %v1398_v12 = vrot.slane %v1397_v53, 2  ;;  %v1509_v47 = vmax.f32 %v1417_v25, %v1508_v51 }
 0x1d7   :  { %v1623_v5 = vmax.f32 %v2873_v45, %v3138_v20  ;;  %v1636_v38 = vrot.slane %v1545_v23, 4  ;;  %v1629_v62 = vmax.f32 %v1627_v57, %v1628_v15  ;;  %v1666_v8 = vmul.f32 %v3088_v17, %v2855_v40 }
 0x1d8   :  { %v1634_v9 = vrot.slane %v1633_v22, 1  ;;  %v1667_v4 = vmul.f32 %v2449_v33, %v1293_v46  ;;  %v1305_v63 = vmax.f32 %v1303_v37, %v1304_v2  ;;  %v1399_v14 = vmax.f32 %v1397_v53, %v1398_v12 }
 0x1d9   :  { %v1510_v54 = vrot.slane %v1509_v47, 2  ;;  %v1637_v18 = vmax.f32 %v1545_v23, %v1636_v38  ;;  %v1668_v21 = vmul.f32 %v3088_v17, %v1299_v39  ;;  %v1695_v45 = vmul.f32 %v3089_v26, %v2876_v32 }
 0x1da   :  { %v1696_v3 = vmul.f32 %v2451_v59, %v1389_v1  ;;  %v1697_v52 = vmul.f32 %v3089_v26, %v1395_v35  ;;  %v1400_v57 = vrot.slane %v1399_v14, 1  ;;  %v1635_v31 = vmax.f32 %v1633_v22, %v1634_v9  ;;  %v3142_v9 = vld [vmem:[#allocation38_spill] sm:$0xff] }
 0x1db   :  { %v1638_v15 = vrot.slane %v1637_v18, 2  ;;  %v1511_v25 = vmax.f32 %v1509_v47, %v1510_v54  ;;  %v1707_v40 = vadd.f32 %v2791_v0, %v2784_v58  ;;  %v1708_v46 = vadd.f32 %v2806_v61, %v2800_v43  ;;  %v3139_v47 = vld [vmem:[#allocation39_spill] sm:$0xff] }
 0x1dc   :  { %v1709_v17 = vadd.f32 %v2838_v16, %v2823_v55  ;;  %v1710_v39 = vadd.f32 %v2852_v50, %v2847_v28  ;;  %v1401_v32 = vmax.f32 %v1399_v14, %v1400_v57  ;;  %v1669_v26 = vmul.f32 %v2449_v33, %v1305_v63  ;;  %v3143_v63 = vld [vmem:[#allocation32_spill] sm:$0xff]  ;;  %v3144_v14 = vld [vmem:[#allocation21_spill] sm:$0xff] }
 0x1dd   :  { %v1639_v1 = vmax.f32 %v1637_v18, %v1638_v15  ;;  %v1711_v35 = vadd.f32 %v1695_v45, %v1666_v8  ;;  %v1712_v6 = vadd.f32 %v1696_v3, %v1667_v4  ;;  %v1713_v34 = vadd.f32 %v1697_v52, %v1668_v21  ;;  %v3145_v18 = vld [vmem:[#allocation33_spill] sm:$0xff]  ;;  %v3146_v21 = vld [vmem:[#allocation24_spill] sm:$0xff]  ;;  %v3148_v52 = vld [vmem:[#allocation34_spill] sm:$0xff] }
 0x1de   :  { %v1736_v37 = vmul.f32 %v2447_v29, %v2788_v10  ;;  %v1737_v58 = vmul.f32 %v2455_v60, %v2818_v13  ;;  %v1512_v0 = vrot.slane %v1511_v25, 1  ;;  %v1698_v61 = vmul.f32 %v2451_v59, %v1401_v32  ;;  %v3147_v3 = vld [vmem:[#allocation25_spill] sm:$0xff]  ;;  %v3149_v15 = vld [vmem:[#allocation35_spill] sm:$0xff] }
 0x1df   :  { %v1640_v43 = vrot.slane %v1639_v1, 1  ;;  %v1738_v55 = vmul.f32 %v2447_v29, %v2840_v24  ;;  %v1739_v16 = vmul.f32 %v2455_v60, %v2858_v11  ;;  %v1740_v33 = vmul.f32 %v2447_v29, %v1623_v5 }
 0x1e0   :  { %v1741_v28 = vmul.f32 %v2455_v60, %v1629_v62  ;;  %v1742_v50 = vmul.f32 %v2447_v29, %v1635_v31  ;;  %v1714_v53 = vadd.f32 %v1698_v61, %v1669_v26  ;;  %v1750_v13 = vadd.f32 %v2748_v56, %v2734_v42  ;;  %v3140_v42 = vld [vmem:[#allocation36_spill] sm:$0xff] }
 0x1e1   :  { %v1641_v10 = vmax.f32 %v1639_v1, %v1640_v43  ;;  %v1751_v59 = vadd.f32 %v2761_v44, %v2752_v48  ;;  %v1752_v51 = vadd.f32 %v1736_v37, %v1707_v40  ;;  %v1753_v23 = vadd.f32 %v1737_v58, %v1708_v46  ;;  %v3141_v44 = vld [vmem:[#allocation37_spill] sm:$0xff]  ;;  %v3151_v1 = vld [vmem:[#allocation22_spill] sm:$0xff] }
 0x1e2   :  { %v1754_v24 = vadd.f32 %v1738_v55, %v1709_v17  ;;  %v1755_v20 = vadd.f32 %v1739_v16, %v1710_v39  ;;  %v1756_v22 = vadd.f32 %v1740_v33, %v1711_v35  ;;  %v1757_v5 = vadd.f32 %v1741_v28, %v1712_v6  ;;  %v3152_v33 = vld [vmem:[#allocation23_spill] sm:$0xff] }
 0x1e3   :  { %v1743_v11 = vmul.f32 %v2455_v60, %v1641_v10  ;;  %v1758_v2 = vadd.f32 %v1742_v50, %v1713_v34  ;;  %v1513_v12 = vmax.f32 %v1511_v25, %v1512_v0  ;;  %v1779_v29 = vmul.f32 %v3090_v27, %v2743_v41 }
 0x1e4   :  { %v1780_v38 = vmul.f32 %v3139_v47, %v2756_v36  ;;  %v1781_v56 = vmul.f32 %v3090_v27, %v3140_v42  ;;  %v1782_v62 = vmul.f32 %v3139_v47, %v3141_v44  ;;  %v1783_v60 = vmul.f32 %v3090_v27, %v3142_v9 }
 0x1e5   :  { %v1759_v48 = vadd.f32 %v1743_v11, %v1714_v53  ;;  %v1784_v8 = vmul.f32 %v3139_v47, %v2906_v7  ;;  %v1785_v4 = vmul.f32 %v3090_v27, %v2909_v19  ;;  %v1786_v41 = vmul.f32 %v3139_v47, %v2911_v30  ;;  %v3150_v7 = vld [vmem:[#allocation26_spill] sm:$0xff] }
 0x1e6   :  { %v1787_v36 = vmul.f32 %v3090_v27, %v2915_v49  ;;  %v1789_v54 = vadd.f32 %v3144_v14, %v3143_v63  ;;  %v1790_v45 = vadd.f32 %v3146_v21, %v3145_v18  ;;  %v1793_v57 = vadd.f32 %v3148_v52, %v3147_v3 }
 0x1e7   :  { %v1794_v25 = vadd.f32 %v3150_v7, %v3149_v15  ;;  %v1795_v31 = vadd.f32 %v1779_v29, %v1750_v13  ;;  %v1796_v19 = vadd.f32 %v1780_v38, %v1751_v59  ;;  %v1797_v40 = vadd.f32 %v1781_v56, %v1752_v51 }
 0x1e8   :  { %v1798_v46 = vadd.f32 %v1782_v62, %v1753_v23  ;;  %v1799_v30 = vadd.f32 %v1783_v60, %v1754_v24  ;;  %v1800_v17 = vadd.f32 %v1784_v8, %v1755_v20  ;;  %v1801_v39 = vadd.f32 %v1785_v4, %v1756_v22 }
 0x1e9   :  { %v1802_v27 = vadd.f32 %v1786_v41, %v1757_v5  ;;  %v1803_v49 = vadd.f32 %v1787_v36, %v1758_v2  ;;  %v1788_v32 = vmul.f32 %v3139_v47, %v1513_v12  ;;  %v1821_v26 = vrot.slane %v3151_v1, 7  ;;  %v3154_v41 = vld [vmem:[#allocation27_spill] sm:$0xff] }
 0x1ea   :  { %v1824_v35 = vrot.slane %v1793_v57, 6  ;;  %v1827_v6 = vrot.slane %v1795_v31, 5  ;;  %v1830_v34 = vrot.slane %v1797_v40, 4  ;;  %v1833_v0 = vrot.slane %v1799_v30, 3 }
 0x1eb   :  { %v1804_v37 = vadd.f32 %v1788_v32, %v1759_v48  ;;  %v1823_v58 = vsel %vm1822_vm11, %v1821_v26, %v1789_v54  ;;  %v1836_v61 = vrot.slane %v1801_v39, 2  ;;  %v1839_v16 = vrot.slane %v1803_v49, 1 }
 0x1ec   :  { %v1826_v43 = vsel %vm1825_vm12, %v1824_v35, %v1823_v58  ;;  %v1842_v28 = vrot.slane %v3152_v33, 7  ;;  %v1844_v50 = vrot.slane %v1794_v25, 6  ;;  %v1846_v53 = vrot.slane %v1796_v19, 5 }
 0x1ed   :  { %v1829_v55 = vsel %vm1828_vm13, %v1827_v6, %v1826_v43  ;;  %v1848_v13 = vrot.slane %v1798_v46, 4  ;;  %v1850_v23 = vrot.slane %v1800_v17, 3  ;;  %v1852_v11 = vrot.slane %v1802_v27, 2 }
 0x1ee   :  { %v1832_v10 = vsel %vm1831_vm14, %v1830_v34, %v1829_v55  ;;  %v1843_v51 = vsel %vm1822_vm11, %v1842_v28, %v1790_v45  ;;  %v1854_v2 = vrot.slane %v1804_v37, 1  ;;  %v1862_v56 = vstv %s3007_s4  ;;  %s2164_s4 = smov [#allocation9]  }
 0x1ef   :  { %v1835_v59 = vsel %vm1834_vm15, %v1833_v0, %v1832_v10  ;;  %v1845_v20 = vsel %vm1825_vm12, %v1844_v50, %v1843_v51  ;;  %v3153_v8 = vlaneseq  ;;  %s1890_s12 = sshll.u32 %s2164_s4, 4  ;;  %s1891_s12 = int_to_ptr.vmem [resolvable:$true] %s1890_s12 }
 0x1f0   :  { %v1838_v24 = vsel %vm1837_vm0, %v1836_v61, %v1835_v59  ;;  %v1847_v5 = vsel %vm1828_vm13, %v1846_v53, %v1845_v20  ;;  %s2130_s13 = scalar_lea.vmem %s1891_s12, 16  ;;  %s2134_s14 = scalar_lea.vmem %s1891_s12, 32 }
 0x1f1   :  { %v1841_v22 = vsel %vm1840_vm1, %v1839_v16, %v1838_v24  ;;  %v1849_v12 = vsel %vm1831_vm14, %v1848_v13, %v1847_v5  ;;  %v1871_v4 = vand.u32 127, %v3153_v8  ;;  %p2131_p1 = scmp.ne.s32.totalorder %s1891_s12, %s2130_s13  ;;  %p2135_p2 = scmp.lt.s32.totalorder %s1891_s12, %s1891_s12 }
 0x1f2   :  { %v1851_v29 = vsel %vm1834_vm15, %v1850_v23, %v1849_v12  ;;  %p2136_p3 = scmp.lt.s32.totalorder %s2134_s14, %s2130_s13 }
 0x1f3   :  { %v1853_v47 = vsel %vm1837_vm0, %v1852_v11, %v1851_v29  ;;  %vm1872_vm2 = vcmp.eq.s32.totalorder %v3154_v41, %v1871_v4 }
 0x1f4   :  { %v1855_v38 = vsel %vm1840_vm1, %v1854_v2, %v1853_v47  ;;  %p2137_p4 = por %p2136_p3, %p2135_p2 }
 0x1f5   :  { %v1858_v42 = vadd.f32 %v1855_v38, %v1841_v22 }
 0x1f6   :  { %p2138_p5 = pnand %p2137_p4, %p2131_p1 }
 0x1f7   :  { %1859 = vadd.xlane.f32.xlu0 %v1858_v42 }
 0x280   :  { %v1860_v48 = vpop.xlane.xlu0 %1859 }
 0x281   :  { %v1863_v44 = vadd.f32 %v1862_v56, %v1860_v48 }
 0x283   :  { %v1976_v62 = vmul.f32 -1.442695, %v1863_v44 }
 0x285   :  { %2066 = vpow2.f32 %v1976_v62 }
 0x292   :  { %v2067_v9 = vpop.eup %2066 }
 0x293   :  { %v1867_v60 = vadd.f32 1.0, %v2067_v9 }
 0x295   :  { %2068 = vrcp.f32 %v1867_v60 }
 0x2a2   :  { %v2069_v36 = vpop.eup %2068 }
 0x2a3   :  { %v1873_v63 = vsel %vm1872_vm2, %v2069_v36, 0.0 }
 0x2a4   :  { %v1875_v14 = vsel %vm1874_vm3, %v1873_v63, 0.0 }
 0x2a5   :  { %v1876_v54 = vrot.slane %v1875_v14, 4 }
 0x2a7   :  { %v1877_v18 = vadd.f32 %v1876_v54, %v1875_v14 }
 0x2a9   :  { %v1878_v21 = vrot.slane %v1877_v18, 2 }
 0x2ab   :  { %v1879_v45 = vadd.f32 %v1878_v21, %v1877_v18 }
 0x2ad   :  { %v1880_v3 = vrot.slane %v1879_v45, 1 }
 0x2af   :  { %v1881_v52 = vadd.f32 %v1880_v3, %v1879_v45 }
 0x2b1   :  { %1883 = vst.msk [vmem:[#allocation9] sm:$0x1] %vm1882_vm4, %v1881_v52 }
 0x2b2   :  { %2141 = shalt.err (!%p2138_p5)
}
 0x2b3   :  { %1893 = dma.vmem_to_hbm [thread:$0]  %s1891_s12, 16, %s3008_s5, [#allocation5]  }
 0x2b4   :  { %2154 = dma.done.wait [#allocation5], 16  }
 0x2b5   :  { %2155 = vsyncadd [#allocation5], 4294967280 }
 0x2b6   :  { %1897 = vsyncpa [#allocation4], 1 }
 0x2b7   :  { %1898 = vsyncpa [#allocation7], 1 }
 0x2b8   :  { %1899 = vsyncpa [#allocation5], 1 }

</bundles_post_ra>
